<compile_context>
chip_gen: v7x
topology: tpu7x:2x2x1
jax: 0.10.0
libtpu: 0.0.40
codegen_flags: <defaults>
</compile_context>

<pallas_src>
import jax
import jax.numpy as jnp
from jax.experimental import pallas as pl
from jax.experimental.pallas import tpu as pltpu


def evi_softmax_kernel(mu_ref, sigma_ref, mu_y_ref, sigma_y_ref):
    # mu_ref:      (Bblk, 1, N)  means for this block of batch rows
    # sigma_ref:   (Bblk, N, N)  input covariances (native dtype, never up-cast)
    # mu_y_ref:    (Bblk, 1, N)  softmax output
    # sigma_y_ref: (Bblk, N, N)  propagated covariance J @ sigma @ J^T
    _, _, N = mu_ref.shape

    # Numerically-stable softmax over the feature axis, f32 math.
    mu = mu_ref[...].astype(jnp.float32)                     # (Bblk, 1, N)
    mu_max = jnp.max(mu, axis=-1, keepdims=True)
    e = jnp.exp(mu - mu_max)
    p3 = e / jnp.sum(e, axis=-1, keepdims=True)              # (Bblk, 1, N)
    mu_y_ref[...] = p3.astype(mu_y_ref.dtype)

    # Softmax Jacobian J = diag(p) - p p^T. Exactly symmetric, so J^T == J and the
    # second operand of both matmuls below needs no transpose.
    p = p3[:, 0, :]                                          # (Bblk, N)
    p_col = p[:, :, None]                                    # (Bblk, N, 1)
    p_row = p[:, None, :]                                    # (Bblk, 1, N)
    eye = (jax.lax.broadcasted_iota(jnp.int32, (N, N), 0) ==
           jax.lax.broadcasted_iota(jnp.int32, (N, N), 1))   # (N, N) bool
    outer = p_col * p_row                                    # (Bblk, N, N)
    J = jnp.where(eye[None, :, :], p_col - outer, -outer)    # (Bblk, N, N) f32

    # Sandwich sigma_y = J @ (sigma @ J^T). sigma stays in its own dtype; J is cast to
    # match (fast low-precision MXU path when sigma is bf16); accumulate in f32.
    sig = sigma_ref[...]
    Jm = J.astype(sig.dtype)
    inner = jnp.einsum('bij,bjk->bik', sig, Jm,
                       preferred_element_type=jnp.float32)   # sigma @ J^T (J symmetric)
    out = jnp.einsum('bij,bjk->bik', Jm, inner.astype(sig.dtype),
                     preferred_element_type=jnp.float32)     # J @ (sigma @ J^T)
    sigma_y_ref[...] = out.astype(sigma_y_ref.dtype)


def _pick_block_b(B, max_block=4):
    # Pack a few batch rows per grid step (amortize per-step overhead) while keeping a
    # non-trivial parallel grid so megacore sharding (v7x) still has work to split.
    for d in range(min(B, max_block), 0, -1):
        if B % d == 0:
            return d
    return 1


def evi_softmax(mu, sigma, *, block_b=None):
    B, N = mu.shape
    assert sigma.shape == (B, N, N), sigma.shape
    if block_b is None:
        block_b = _pick_block_b(B)
    assert B % block_b == 0
    grid = (B // block_b,)

    # Present mu as (B, 1, N) so the block's trailing two dims are full array dims
    # (clean (8,128)-rule compliance) and the written extent is lane-dense (N lanes).
    mu3 = mu.reshape(B, 1, N)

    mu_y3, sigma_y = pl.pallas_call(
        evi_softmax_kernel,
        out_shape=(jax.ShapeDtypeStruct((B, 1, N), mu.dtype),
                   jax.ShapeDtypeStruct((B, N, N), sigma.dtype)),
        grid=grid,
        in_specs=[pl.BlockSpec((block_b, 1, N), lambda g: (g, 0, 0)),
                  pl.BlockSpec((block_b, N, N), lambda g: (g, 0, 0))],
        out_specs=(pl.BlockSpec((block_b, 1, N), lambda g: (g, 0, 0)),
                   pl.BlockSpec((block_b, N, N), lambda g: (g, 0, 0))),
        compiler_params=pltpu.CompilerParams(
            dimension_semantics=("parallel",)),
    )(mu3, sigma)

    return mu_y3.reshape(B, N), sigma_y


def reference(mu, sigma):
    # Plain-JAX reference matching the PyTorch module's forward semantics.
    B, N = mu.shape
    p = jax.nn.softmax(mu, axis=1)
    grad_f1 = p[:, :, None] * p[:, None, :]                       # mu_y mu_y^T
    diag_f = p[:, :, None] * jnp.eye(N, dtype=p.dtype)[None]      # diag_embed(mu_y)
    grad_soft = diag_f - grad_f1
    hp = jax.lax.Precision.HIGHEST
    inner = jnp.einsum('bij,bkj->bik', sigma, grad_soft, precision=hp)   # sigma @ J^T
    sigma_y = jnp.einsum('bij,bjk->bik', grad_soft, inner, precision=hp)  # J @ (...)
    return p, sigma_y


if __name__ == "__main__":
    key = jax.random.PRNGKey(0)
    B, N = 8, 128
    k_mu, k_sig = jax.random.split(key)
    mu = jax.random.normal(k_mu, (B, N), dtype=jnp.float32)
    sigma = jax.random.normal(k_sig, (B, N, N), dtype=jnp.float32)

    mu_y, sigma_y = evi_softmax(mu, sigma)
    jax.block_until_ready((mu_y, sigma_y))

    mu_y_ref, sigma_y_ref = reference(mu, sigma)
    assert mu_y.shape == (B, N)
    assert sigma_y.shape == (B, N, N)
    assert jnp.allclose(mu_y, mu_y_ref, atol=1e-6, rtol=1e-6)
    assert jnp.allclose(sigma_y, sigma_y_ref, atol=1e-5, rtol=1e-4)
    print("KERNEL_OK")
</pallas_src>

<mosaic_0001>
module attributes {stable_mosaic.version = 11 : i64} {
  func.func @evi_softmax_kernel(%arg0: i32, %arg1: memref<4x1x128xf32, #tpu.memory_space<vmem>>, %arg2: memref<4x128x128xf32, #tpu.memory_space<vmem>>, %arg3: memref<4x1x128xf32, #tpu.memory_space<vmem>>, %arg4: memref<4x128x128xf32, #tpu.memory_space<vmem>>) attributes {dimension_semantics = [#tpu.dimension_semantics<parallel>], iteration_bounds = array<i64: 2>, scalar_prefetch = 0 : i64, scratch_operands = 0 : i64, tpu.core_type = #tpu.core_type<tc>, window_params = [{transform_indices = @transform_0, window_bounds = array<i64: 4, 1, 128>}, {transform_indices = @transform_1, window_bounds = array<i64: 4, 128, 128>}, {transform_indices = @transform_2, window_bounds = array<i64: 4, 1, 128>}, {transform_indices = @transform_3, window_bounds = array<i64: 4, 128, 128>}]} {
    %c0 = arith.constant 0 : index
    %c0_0 = arith.constant 0 : index
    %c0_1 = arith.constant 0 : index
    %0 = vector.load %arg1[%c0, %c0_0, %c0_1] : memref<4x1x128xf32, #tpu.memory_space<vmem>>, vector<4x1x128xf32>
    %cst = arith.constant dense<0xFF800000> : vector<4x1xf32>
    %1 = vector.multi_reduction <maximumf>, %0, %cst [2] : vector<4x1x128xf32> to vector<4x1xf32>
    %2 = vector.shape_cast %1 : vector<4x1xf32> to vector<4x1x1xf32>
    %3 = vector.broadcast %2 : vector<4x1x1xf32> to vector<4x1x128xf32>
    %4 = arith.subf %0, %3 : vector<4x1x128xf32>
    %5 = math.exp %4 : vector<4x1x128xf32>
    %cst_2 = arith.constant dense<0.000000e+00> : vector<4x1xf32>
    %6 = vector.multi_reduction <add>, %5, %cst_2 [2] : vector<4x1x128xf32> to vector<4x1xf32>
    %7 = vector.shape_cast %6 : vector<4x1xf32> to vector<4x1x1xf32>
    %8 = vector.broadcast %7 : vector<4x1x1xf32> to vector<4x1x128xf32>
    %9 = arith.divf %5, %8 : vector<4x1x128xf32>
    %c0_3 = arith.constant 0 : index
    %c0_4 = arith.constant 0 : index
    %c0_5 = arith.constant 0 : index
    %10 = vector.load %arg3[%c0_3, %c0_4, %c0_5] : memref<4x1x128xf32, #tpu.memory_space<vmem>>, vector<4x1x128xf32>
    tpu.vector_store %arg3[%c0_3, %c0_4, %c0_5], %9 {strides = array<i32>} : memref<4x1x128xf32, #tpu.memory_space<vmem>>, vector<4x1x128xf32>,
    %11 = vector.shape_cast %9 : vector<4x1x128xf32> to vector<4x128xf32>
    %12 = vector.shape_cast %11 : vector<4x128xf32> to vector<4x128x1xf32>
    %13 = vector.shape_cast %11 : vector<4x128xf32> to vector<4x1x128xf32>
    %14 = tpu.iota {dimensions = array<i32: 0>} : vector<128x128xi32>
    %15 = tpu.iota {dimensions = array<i32: 1>} : vector<128x128xi32>
    %16 = arith.cmpi eq, %14, %15 : vector<128x128xi32>
    %17 = vector.broadcast %12 : vector<4x128x1xf32> to vector<4x128x128xf32>
    %18 = vector.broadcast %13 : vector<4x1x128xf32> to vector<4x128x128xf32>
    %19 = arith.mulf %17, %18 : vector<4x128x128xf32>
    %20 = vector.shape_cast %16 : vector<128x128xi1> to vector<1x128x128xi1>
    %21 = vector.broadcast %12 : vector<4x128x1xf32> to vector<4x128x128xf32>
    %22 = arith.subf %21, %19 : vector<4x128x128xf32>
    %cst_6 = arith.constant 0.000000e+00 : f32
    %23 = vector.broadcast %cst_6 : f32 to vector<4x128x128xf32>
    %24 = arith.subf %23, %19 : vector<4x128x128xf32>
    %25 = vector.shape_cast %20 : vector<1x128x128xi1> to vector<1x128x128xi1>
    %26 = vector.broadcast %25 : vector<1x128x128xi1> to vector<4x128x128xi1>
    %27 = arith.select %26, %22, %24 : vector<4x128x128xi1>, vector<4x128x128xf32>
    %c0_7 = arith.constant 0 : index
    %c0_8 = arith.constant 0 : index
    %c0_9 = arith.constant 0 : index
    %28 = vector.load %arg2[%c0_7, %c0_8, %c0_9] : memref<4x128x128xf32, #tpu.memory_space<vmem>>, vector<4x128x128xf32>
    "tpu.trace_start"() <{level = 10 : i32, message = "bij,bjk->bik"}> : () -> ()
    %cst_10 = arith.constant dense<0.000000e+00> : vector<4x128x128xf32>
    %29 = tpu.matmul %28, %27, %cst_10 {dimension_numbers = #tpu.dot_dimension_numbers<[2], [1], [1], [2], [0, 0, 0, 1, 1, 2], [0], [0]>} : vector<4x128x128xf32>, vector<4x128x128xf32>, vector<4x128x128xf32> -> vector<4x128x128xf32>
    %cst_11 = arith.constant dense<0.000000e+00> : vector<4x128x128xf32>
    %30 = tpu.matmul %27, %29, %cst_11 {dimension_numbers = #tpu.dot_dimension_numbers<[2], [1], [1], [2], [0, 0, 0, 1, 1, 2], [0], [0]>} : vector<4x128x128xf32>, vector<4x128x128xf32>, vector<4x128x128xf32> -> vector<4x128x128xf32>
    "tpu.trace_stop"() : () -> ()
    %c0_12 = arith.constant 0 : index
    %c0_13 = arith.constant 0 : index
    %c0_14 = arith.constant 0 : index
    %31 = vector.load %arg4[%c0_12, %c0_13, %c0_14] : memref<4x128x128xf32, #tpu.memory_space<vmem>>, vector<4x128x128xf32>
    tpu.vector_store %arg4[%c0_12, %c0_13, %c0_14], %30 {strides = array<i32>} : memref<4x128x128xf32, #tpu.memory_space<vmem>>, vector<4x128x128xf32>,
    return
  }
  func.func @transform_0(%arg0: i32) -> (i32, i32, i32) {
    %c0_i32 = arith.constant 0 : i32
    %c0_i32_0 = arith.constant 0 : i32
    %c0_i32_1 = arith.constant 0 : i32
    return %arg0, %c0_i32, %c0_i32_0 : i32, i32, i32
  }
  func.func @transform_1(%arg0: i32) -> (i32, i32, i32) {
    %c0_i32 = arith.constant 0 : i32
    %c0_i32_0 = arith.constant 0 : i32
    %c0_i32_1 = arith.constant 0 : i32
    return %arg0, %c0_i32, %c0_i32_0 : i32, i32, i32
  }
  func.func @transform_2(%arg0: i32) -> (i32, i32, i32) {
    %c0_i32 = arith.constant 0 : i32
    %c0_i32_0 = arith.constant 0 : i32
    %c0_i32_1 = arith.constant 0 : i32
    return %arg0, %c0_i32, %c0_i32_0 : i32, i32, i32
  }
  func.func @transform_3(%arg0: i32) -> (i32, i32, i32) {
    %c0_i32 = arith.constant 0 : i32
    %c0_i32_0 = arith.constant 0 : i32
    %c0_i32_1 = arith.constant 0 : i32
    return %arg0, %c0_i32, %c0_i32_0 : i32, i32, i32
  }
}

</mosaic_0001>

<bundles_post_ra>
// kernel: tpu_custom_call.1
= control target key start
LH: loop header
LB: loop body
LE: loop exit
PB: predicated region body
PF: predicated region fallthrough
CT: control target
= control target key end

     0   :  { %9 = vsyncpa [#allocation3], 0  ;;  %s4723_s0 = inlined_call_operand.hbm [shape: f32[8,1,128], index: 0, kind: input, shape index: {}]   ;;  %s4724_s1 = inlined_call_operand.hbm [shape: f32[8,128,128], index: 1, kind: input, shape index: {}]   ;;  %s4725_s2 = inlined_call_operand.hbm [shape: f32[8,1,128], index: 2, kind: output, shape index: {0}]   ;;  %s4726_s3 = inlined_call_operand.hbm [shape: f32[8,128,128], index: 3, kind: output, shape index: {1}]  }
   0x1   :  { %11 = vsyncpa [#allocation3 + $0x1], 0 }
   0x2   :  { %12 = vsyncpa [#allocation6], 0 }
   0x3   :  { %14 = vsyncpa [#allocation6 + $0x1], 0 }
   0x4   :  { %15 = vsyncpa [#allocation4], 0 }
   0x5   :  { %17 = vsyncpa [#allocation4 + $0x1], 0 }
   0x6   :  { %18 = vsyncpa [#allocation9], 0 }
   0x7   :  { %20 = vsyncpa [#allocation9 + $0x1], 0  ;;  %s3631_s12 = smov 0   ;;  %s3633_s13 = smov 0  }
   0x8   :  { %s3635_s14 = smov 0   ;;  %s3637_s15 = smov 0  }
   0x9 LB: > { %s3652_s16 = sadd.s32 4294967295, %s3597_s15   ;;  %s2365_s17 = sadd.s32 4294967294, %s3597_s15   ;;  %s3597_s15 = sphi %s3637_s15, %s4802_s15   ;;  %s3593_s14 = sphi %s3635_s14, %s4801_s14   ;;  %s3589_s13 = sphi %s3633_s13, %s4800_s13   ;;  %s3585_s12 = sphi %s3631_s12, %s4799_s12  }
   0xa   : > { %s3656_s18 = sadd.s32 1, %s3597_s15   ;;  %s33_s19 = sadd.s32 1, %s3593_s14 }
   0xb   : > { %s30_s20 = ssub.s32 %s3597_s15, %s3656_s18  ;;  %p40_p0 = scmp.ne.s32.totalorder %s3593_s14, %s3589_s13 }
   0xc   : > { %p31_p1 = scmp.eq.s32.totalorder %s30_s20, 0  ;;  %p41_p2 = scmp.eq.s32.totalorder %s3597_s15, 0 }
   0xd   : > { %p46_p3 = scmp.ne.s32.totalorder %s3589_s13, %s3585_s12  ;;  %p47_p4 = scmp.eq.s32.totalorder %s3652_s16, 0 }
   0xe   : > { %s3668_s21 = scalar_select %p31_p1, %s3593_s14, %s33_s19  }
   0xf   : > { %p3670_p5 = por %p41_p2, %p40_p0  ;;  %p3674_p6 = por %p47_p4, %p46_p3 }
  0x10   : > { %p96_p7 = scmp.eq.s32.totalorder %s3652_s16, 1  ;;  %p102_p8 = scmp.eq.s32.totalorder %s2365_s17, 1 }
  0x11   : > { %s4750_s23 = scalar_select %p3674_p6, 1, 0 }
  0x12   : > { %p3377_p10 = scmp.lt.s32.totalorder %s3597_s15, 2  ;;  %p3681_p11 = por %p96_p7, %p40_p0 }
  0x13   : > { %p3685_p12 = por %p102_p8, %p46_p3  ;;  %s3690_s26 = sand.u32 1, %s3593_s14  }
  0x14   : > { %s4751_s24 = scalar_select %p3681_p11, 1, 0 }
  0x15   : > { %s4752_s25 = scalar_select %p3685_p12, 1, 0 }
  0x16   : > { %s2389_s27 = sshll.u32 %s3597_s15, 6  ;;  %s2368_s28 = sshll.u32 %s3690_s26, 2 }
  0x17   : > { %s3697_s4 = scalar_lea.hbm %s4723_s0, %s2389_s27  ;;  %s152_s5 = scalar_lea.vmem [#allocation2], %s2368_s28 }
  0x18   : > { %s159_s6 = sshll.u32 %s152_s5, 4  ;;  %p3701_p13 = pnand %p3377_p10, %p3670_p5  ;;  %s3705_s6 = int_to_ptr.vmem [resolvable:$true] %s159_s6 }
  0x19   : > { %s149_s8 = scalar_lea.sflag [#allocation3], %s3690_s26  ;;  %s3435_s9 = scalar_lea.hbm %s3697_s4, 64 }
  0x1a   : > { %p3436_p0 = scmp.ne.s32.totalorder %s3697_s4, %s3435_s9  ;;  %p3437_p1 = pneg %p3701_p13 }
  0x1b   : > { %s3440_s17 = scalar_lea.hbm %s4723_s0, 128  ;;  %p3441_p4 = scmp.lt.u32.totalorder %s3697_s4, %s4723_s0 }
  0x1c   : > { %p3438_p2 = pnand %p3437_p1, %p3436_p0  ;;  %p3442_p5 = scmp.lt.u32.totalorder %s3440_s17, %s3435_s9 }
  0x1d   : > { %p3444_p8 = scmp.lt.u32.totalorder %s3435_s9, %s3697_s4 }
  0x1e   : > { %p3439_p3 = pneg %p3438_p2  ;;  %p3443_p7 = por %p3442_p5, %p3441_p4 }
  0x20   : > { %p3445_p10 = por %p3444_p8, %p3443_p7 }
  0x22   : > { %p3446_p9 = pnand %p3445_p10, %p3439_p3 }
  0x24   : > { %3449 = shalt.err (!%p3446_p9)
}
  0x25   : > { %s3450_s22 = scalar_lea.vmem %s3705_s6, 64  ;;  %s3599_s27 = smov [#allocation2]  }
  0x26   : > { %p3451_p0 = scmp.ne.s32.totalorder %s3705_s6, %s3450_s22  ;;  %s3455_s28 = sshll.u32 %s3599_s27, 4  ;;  %s3456_s28 = int_to_ptr.vmem [resolvable:$false] %s3455_s28 }
  0x27   : > { %s3457_s29 = scalar_lea.vmem %s3456_s28, 128  ;;  %p3458_p11 = scmp.lt.s32.totalorder %s3705_s6, %s3456_s28 }
  0x28   : > { %p3453_p2 = pnand %p3451_p0, %p3437_p1  ;;  %p3459_p4 = scmp.lt.s32.totalorder %s3457_s29, %s3450_s22 }
  0x2a   : > { %p3454_p12 = pneg %p3453_p2  ;;  %p3460_p5 = por %p3459_p4, %p3458_p11 }
  0x2c   : > { %p3461_p7 = pnand %p3460_p5, %p3454_p12 }
  0x2e   : > { %3464 = shalt.err (!%p3461_p7)
}
  0x2f   : > { %s3600_s30 = smov 16   ;;  %s3601_s5 = smov 1  }
  0x30   : > { %3366 = dma.hbm_to_vmem [thread:$0]  (!%p3701_p13), %s3697_s4, 64, %s3705_s6, %s149_s8, %s3600_s30, %s3600_s30, %s3601_s5  }
  0x31   : > { %p2375_p9 = scmp.ge.s32.totalorder %s3597_s15, 1  ;;  %p189_p3 = scmp.lt.s32.totalorder %s3597_s15, 3 }
  0x32   : > { %s2371_s9 = sshll.u32 %s3690_s26, 9  ;;  %s2391_s11 = sshll.u32 %s3597_s15, 13 }
  0x33   : > { %p3738_p11 = pnand %p2375_p9, %p189_p3  ;;  %s173_s17 = scalar_lea.vmem [#allocation5], %s2371_s9 }
  0x34   : > { %s181_s19 = sshll.u32 %s173_s17, 4  ;;  %s3746_s27 = scalar_lea.hbm %s4724_s1, %s2391_s11  ;;  %s3748_s19 = int_to_ptr.vmem [resolvable:$true] %s181_s19 }
  0x35   : > { %s170_s4 = scalar_lea.sflag [#allocation6], %s3690_s26  ;;  %s3465_s6 = scalar_lea.hbm %s3746_s27, 8192 }
  0x36   : > { %p3466_p12 = scmp.ne.s32.totalorder %s3746_s27, %s3465_s6  ;;  %s3470_s29 = scalar_lea.hbm %s4724_s1, 16384 }
  0x37   : > { %p3471_p0 = scmp.lt.u32.totalorder %s3746_s27, %s4724_s1  ;;  %p3472_p2 = scmp.lt.u32.totalorder %s3470_s29, %s3465_s6 }
  0x38   : > { %p3468_p8 = pnand %p3466_p12, %p3437_p1  ;;  %p3474_p5 = scmp.lt.u32.totalorder %s3465_s6, %s3746_s27 }
  0x39   : > { %p3473_p4 = por %p3472_p2, %p3471_p0 }
  0x3a   : > { %p3469_p10 = pneg %p3468_p8 }
  0x3b   : > { %p3475_p7 = por %p3474_p5, %p3473_p4 }
  0x3d   : > { %p3476_p9 = pnand %p3475_p7, %p3469_p10 }
  0x3f   : > { %3479 = shalt.err (!%p3476_p9)
}
  0x40   : > { %s3480_s9 = scalar_lea.vmem %s3748_s19, 8192  ;;  %s3602_s11 = smov [#allocation5]  }
  0x41   : > { %p3481_p3 = scmp.ne.s32.totalorder %s3748_s19, %s3480_s9  ;;  %s3485_s17 = sshll.u32 %s3602_s11, 4  ;;  %s3486_s17 = int_to_ptr.vmem [resolvable:$false] %s3485_s17 }
  0x42   : > { %s3487_s20 = scalar_lea.vmem %s3486_s17, 16384  ;;  %p3488_p6 = scmp.lt.s32.totalorder %s3748_s19, %s3486_s17 }
  0x43   : > { %p3483_p12 = pnand %p3481_p3, %p3437_p1  ;;  %p3489_p0 = scmp.lt.s32.totalorder %s3487_s20, %s3480_s9 }
  0x45   : > { %p3484_p8 = pneg %p3483_p12  ;;  %p3490_p2 = por %p3489_p0, %p3488_p6 }
  0x47   : > { %p3491_p4 = pnand %p3490_p2, %p3484_p8 }
  0x49   : > { %3494 = shalt.err (!%p3491_p4)
}
  0x4a   : > { %s3603_s22 = smov 128   ;;  %s3604_s6 = smov 8  }
  0x4b   : > { %3369 = dma.hbm_to_vmem [thread:$0]  (!%p3701_p13), %s3746_s27, 8192, %s3748_s19, %s170_s4, %s3603_s22, %s3603_s22, %s3604_s6  }
  0x4c   : > { %193 = sbr.rel (%p3738_p11) target bundleno = 1164 (0x48c), region = 28 }
  0x53   : > { %s3779_s8 = sand.u32 1, %s3589_s13   ;;  %p4755_p6 = scmp.ne.s32.totalorder %s4750_s23, 0 }
  0x54   : > { %s2376_s28 = sshll.u32 %s3779_s8, 2  ;;  %s196_s29 = scalar_lea.sflag [#allocation3], %s3779_s8 }
  0x55   : > { %s199_s30 = scalar_lea.vmem [#allocation2], %s2376_s28 }
  0x56   : > { %3568 = dma.done.wait (%p4755_p6), %s196_s29, 64  }
  0x57   : > { %3570 = vsyncadd (%p4755_p6), %s196_s29, 4294967232  ;;  %s2377_s26 = sshll.u32 %s3779_s8, 9  ;;  %s205_s7 = scalar_lea.sflag [#allocation6], %s3779_s8 }
  0x58   : > { %s3793_s10 = scalar_lea.vmem [#allocation5], %s2377_s26 }
  0x59   : > { %3572 = dma.done.wait (%p4755_p6), %s205_s7, 8192  }
  0x5a   : > { %3574 = vsyncadd (%p4755_p6), %s205_s7, 4294959104  ;;  %vm249_vm0 = vcmask 1040384   ;;  %v245_v0 = vld [vmem:[%s199_s30] sm:$0x1]  ;;  %v247_v1 = vld [vmem:[%s199_s30 + $0x2] sm:$0x1]  ;;  %v298_v29 = vlaneseq }
  0x5b   : > { %v246_v2 = vld [vmem:[%s199_s30 + $0x1] sm:$0x1]  ;;  %v250_v3 = vsel %vm249_vm0, %v245_v0, -inf  ;;  %v256_v4 = vsel %vm249_vm0, %v247_v1, -inf  ;;  %v248_v5 = vld [vmem:[%s199_s30 + $0x3] sm:$0x1] }
  0x5c   : > { %251 = vmax.xlane.f32.xlu0 %v250_v3  ;;  %257 = vmax.xlane.f32.xlu1 %v256_v4  ;;  %v253_v6 = vsel %vm249_vm0, %v246_v2, -inf  ;;  %v259_v7 = vsel %vm249_vm0, %v248_v5, -inf  ;;  %v3808_v32 = vshrl.u32 %v298_v29, 7  ;;  %s3813_s23 = scalar_lea.vmem [#allocation7], %s2376_s28  ;;  %v913_v45 = vld [vmem:[%s3793_s10] sm:$0xff]  ;;  %v3891_v50 = vand.u32 127, %v298_v29 }
  0x5d   : > { %2683 = vmatprep.mubr.f32.mxu0 %v913_v45  ;;  %v929_v47 = vld [vmem:[%s3793_s10 + $0x80] sm:$0xff]  ;;  %s2392_s19 = sshll.u32 %s3652_s16, 6  ;;  %s2220_s9 = sshll.u32 %s3813_s23, 4  ;;  %s4578_s9 = int_to_ptr.vmem [resolvable:$true] %s2220_s9 }
  0x5e   : > { %v300_v34 = vsub.s32 0, %v3808_v32  ;;  %2739 = vmatprep.mubr.f32.mxu1 %v929_v47  ;;  %v3888_v49 = vadd.s32 8, %v3808_v32  ;;  %vm585_vm1 = vcmp.eq.s32.totalorder %v3808_v32, %v3891_v50  ;;  %s4575_s5 = scalar_lea.hbm %s4725_s2, %s2392_s19  ;;  %s2202_s11 = scalar_lea.sflag [#allocation4], %s3779_s8 }
  0x5f   : > { %s3495_s17 = scalar_lea.vmem %s4578_s9, 64  ;;  %p4796_p1 = scmp.ne.s32.totalorder %s4751_s24, 0 }
  0x60   : > { %254 = vmax.xlane.f32.xlu0 %v253_v6  ;;  %260 = vmax.xlane.f32.xlu1 %v259_v7  ;;  %vm586_vm2 = vcmp.eq.s32.totalorder %v3888_v49, %v3891_v50  ;;  %v3920_v7 = vadd.s32 16, %v3808_v32  ;;  %p3496_p13 = scmp.ne.s32.totalorder %s4578_s9, %s3495_s17  ;;  %s3605_s20 = smov [#allocation7]  }
  0x61   : > { %s3499_s22 = sshll.u32 %s3605_s20, 4  ;;  %s3500_s22 = int_to_ptr.vmem [resolvable:$false] %s3499_s22 }
  0x62   : > { %vm587_vm3 = vcmp.eq.s32.totalorder %v3920_v7, %v3891_v50  ;;  %p3497_p11 = pnand %p3496_p13, %p4796_p1  ;;  %s3501_s6 = scalar_lea.vmem %s3500_s22, 128 }
  0x63   : > { %p3502_p5 = scmp.lt.s32.totalorder %s4578_s9, %s3500_s22  ;;  %p3503_p7 = scmp.lt.s32.totalorder %s3501_s6, %s3495_s17 }
  0x64   : > { %p3498_p10 = pneg %p3497_p11 }
  0x65   : > { %p3504_p9 = por %p3503_p7, %p3502_p5 }
  0x67   : > { %p3505_p3 = pnand %p3504_p9, %p3498_p10 }
  0xe9   : > { %v252_v8 = vpop.xlane.xlu0 %251  ;;  %v258_v9 = vpop.xlane.xlu1 %257 }
  0xea   : > { %v262_v10 = vsub.f32 %v245_v0, %v252_v8  ;;  %v264_v11 = vsub.f32 %v247_v1, %v258_v9  ;;  %v3923_v8 = vadd.s32 24, %v3808_v32 }
  0xec   : > { %v266_v12 = vmul.f32 1.442695, %v262_v10  ;;  %v270_v13 = vmul.f32 1.442695, %v264_v11  ;;  %vm588_vm4 = vcmp.eq.s32.totalorder %v3923_v8, %v3891_v50 }
  0xed   : > { %v255_v14 = vpop.xlane.xlu0 %254  ;;  %v261_v15 = vpop.xlane.xlu1 %260 }
  0xee   : > { %3419 = vpow2.f32 %v266_v12  ;;  %v263_v16 = vsub.f32 %v246_v2, %v255_v14  ;;  %v265_v17 = vsub.f32 %v248_v5, %v261_v15 }
  0xef   : > { %3421 = vpow2.f32 %v270_v13 }
  0xf0   : > { %v268_v18 = vmul.f32 1.442695, %v263_v16  ;;  %v272_v19 = vmul.f32 1.442695, %v265_v17 }
  0xf2   : > { %3423 = vpow2.f32 %v268_v18 }
  0xf3   : > { %3425 = vpow2.f32 %v272_v19 }
  0xf8   : > { %v3420_v20 = vpop.eup %3419 }
  0xf9   : > { %v3422_v21 = vpop.eup %3421  ;;  %v274_v22 = vsel %vm249_vm0, %v3420_v20, 0.0 }
  0xfa   : > { %275 = vadd.xlane.f32.xlu0 %v274_v22  ;;  %v280_v23 = vsel %vm249_vm0, %v3422_v21, 0.0 }
  0xfc   : > { %v3424_v24 = vpop.eup %3423 }
  0xfd   : > { %v3426_v25 = vpop.eup %3425  ;;  %v277_v26 = vsel %vm249_vm0, %v3424_v24, 0.0 }
  0xfe   : > { %281 = vadd.xlane.f32.xlu0 %v280_v23  ;;  %278 = vadd.xlane.f32.xlu1 %v277_v26  ;;  %v283_v27 = vsel %vm249_vm0, %v3426_v25, 0.0 }
 0x102   : > { %284 = vadd.xlane.f32.xlu1 %v283_v27 }
 0x187   : > { %v276_v28 = vpop.xlane.xlu0 %275 }
 0x188   : > { %3427 = vrcp.f32 %v276_v28 }
 0x18b   : > { %v279_v30 = vpop.xlane.xlu1 %278  ;;  %v282_v31 = vpop.xlane.xlu0 %281 }
 0x18c   : > { %3429 = vrcp.f32 %v279_v30 }
 0x18d   : > { %3431 = vrcp.f32 %v282_v31  ;;  %v3959_v31 = vadd.s32 32, %v3808_v32 }
 0x18f   : > { %v285_v33 = vpop.xlane.xlu1 %284  ;;  %vm589_vm5 = vcmp.eq.s32.totalorder %v3959_v31, %v3891_v50 }
 0x190   : > { %3433 = vrcp.f32 %v285_v33  ;;  %v3962_v33 = vadd.s32 40, %v3808_v32 }
 0x192   : > { %v3428_v35 = vpop.eup %3427  ;;  %vm590_vm6 = vcmp.eq.s32.totalorder %v3962_v33, %v3891_v50 }
 0x193   : > { %v287_v36 = vmul.f32 %v3428_v35, %v3420_v20 }
 0x195   : > { %294 = vst [vmem:[%s3813_s23] sm:$0x1] %v287_v36  ;;  %v3816_v37 = vrot.slane %v287_v36, %v300_v34 }
 0x196   : > { %v3430_v38 = vpop.eup %3429 }
 0x197   : > { %v3432_v39 = vpop.eup %3431  ;;  %v289_v40 = vmul.f32 %v3430_v38, %v3424_v24  ;;  %307 = vbcast.lane.b32.xlu1 %v3816_v37, 264  ;;  %303 = vbcast.lane.b32.xlu0 %v3816_v37, 256 }
 0x198   : > { %v291_v41 = vmul.f32 %v3432_v39, %v3422_v21 }
 0x199   : > { %295 = vst [vmem:[%s3813_s23 + $0x1] sm:$0x1] %v289_v40  ;;  %v3821_v42 = vrot.slane %v289_v40, %v300_v34 }
 0x19a   : > { %v3434_v43 = vpop.eup %3433  ;;  %296 = vst [vmem:[%s3813_s23 + $0x2] sm:$0x1] %v291_v41  ;;  %v3854_v46 = vrot.slane %v291_v41, %v300_v34 }
 0x19b   : > { %v293_v44 = vmul.f32 %v3434_v43, %v3426_v25  ;;  %370 = vbcast.lane.b32.xlu1 %v3821_v42, 256  ;;  %311 = vbcast.lane.b32.xlu0 %v3816_v37, 272 }
 0x19d   : > { %297 = vst [vmem:[%s3813_s23 + $0x3] sm:$0x1] %v293_v44  ;;  %v3859_v48 = vrot.slane %v293_v44, %v300_v34 }
 0x19f   : > { %374 = vbcast.lane.b32.xlu1 %v3821_v42, 264  ;;  %378 = vbcast.lane.b32.xlu0 %v3821_v42, 272 }
 0x1a3   : > { %315 = vbcast.lane.b32.xlu1 %v3816_v37, 280  ;;  %319 = vbcast.lane.b32.xlu0 %v3816_v37, 288 }
 0x1a7   : > { %382 = vbcast.lane.b32.xlu1 %v3821_v42, 280  ;;  %386 = vbcast.lane.b32.xlu0 %v3821_v42, 288 }
 0x1ab   : > { %323 = vbcast.lane.b32.xlu1 %v3816_v37, 296  ;;  %327 = vbcast.lane.b32.xlu0 %v3816_v37, 304 }
 0x1af   : > { %390 = vbcast.lane.b32.xlu1 %v3821_v42, 296  ;;  %394 = vbcast.lane.b32.xlu0 %v3821_v42, 304 }
 0x1b3   : > { %331 = vbcast.lane.b32.xlu1 %v3816_v37, 312  ;;  %335 = vbcast.lane.b32.xlu0 %v3816_v37, 320 }
 0x1b7   : > { %398 = vbcast.lane.b32.xlu1 %v3821_v42, 312  ;;  %402 = vbcast.lane.b32.xlu0 %v3821_v42, 320 }
 0x1bb   : > { %339 = vbcast.lane.b32.xlu1 %v3816_v37, 328  ;;  %343 = vbcast.lane.b32.xlu0 %v3816_v37, 336 }
 0x1bf   : > { %406 = vbcast.lane.b32.xlu1 %v3821_v42, 328  ;;  %410 = vbcast.lane.b32.xlu0 %v3821_v42, 336 }
 0x1c3   : > { %347 = vbcast.lane.b32.xlu1 %v3816_v37, 344  ;;  %351 = vbcast.lane.b32.xlu0 %v3816_v37, 352 }
 0x1c7   : > { %414 = vbcast.lane.b32.xlu1 %v3821_v42, 344  ;;  %418 = vbcast.lane.b32.xlu0 %v3821_v42, 352 }
 0x1cb   : > { %355 = vbcast.lane.b32.xlu1 %v3816_v37, 360  ;;  %359 = vbcast.lane.b32.xlu0 %v3816_v37, 368 }
 0x1cf   : > { %422 = vbcast.lane.b32.xlu1 %v3821_v42, 360  ;;  %426 = vbcast.lane.b32.xlu0 %v3821_v42, 368 }
 0x1d3   : > { %363 = vbcast.lane.b32.xlu1 %v3816_v37, 376  ;;  %437 = vbcast.lane.b32.xlu0 %v3854_v46, 256 }
 0x1d7   : > { %430 = vbcast.lane.b32.xlu1 %v3821_v42, 376  ;;  %504 = vbcast.lane.b32.xlu0 %v3859_v48, 256 }
 0x1db   : > { %441 = vbcast.lane.b32.xlu1 %v3854_v46, 264  ;;  %445 = vbcast.lane.b32.xlu0 %v3854_v46, 272 }
 0x1df   : > { %508 = vbcast.lane.b32.xlu1 %v3859_v48, 264  ;;  %512 = vbcast.lane.b32.xlu0 %v3859_v48, 272 }
 0x1e3   : > { %449 = vbcast.lane.b32.xlu1 %v3854_v46, 280  ;;  %453 = vbcast.lane.b32.xlu0 %v3854_v46, 288 }
 0x1e7   : > { %516 = vbcast.lane.b32.xlu1 %v3859_v48, 280  ;;  %520 = vbcast.lane.b32.xlu0 %v3859_v48, 288 }
 0x1eb   : > { %457 = vbcast.lane.b32.xlu1 %v3854_v46, 296  ;;  %461 = vbcast.lane.b32.xlu0 %v3854_v46, 304 }
 0x1ef   : > { %524 = vbcast.lane.b32.xlu1 %v3859_v48, 296  ;;  %528 = vbcast.lane.b32.xlu0 %v3859_v48, 304 }
 0x1f3   : > { %465 = vbcast.lane.b32.xlu1 %v3854_v46, 312  ;;  %469 = vbcast.lane.b32.xlu0 %v3854_v46, 320 }
 0x1f7   : > { %532 = vbcast.lane.b32.xlu1 %v3859_v48, 312  ;;  %536 = vbcast.lane.b32.xlu0 %v3859_v48, 320 }
 0x1fb   : > { %473 = vbcast.lane.b32.xlu1 %v3854_v46, 328  ;;  %477 = vbcast.lane.b32.xlu0 %v3854_v46, 336 }
 0x1ff   : > { %540 = vbcast.lane.b32.xlu1 %v3859_v48, 328  ;;  %544 = vbcast.lane.b32.xlu0 %v3859_v48, 336 }
 0x203   : > { %481 = vbcast.lane.b32.xlu1 %v3854_v46, 344  ;;  %485 = vbcast.lane.b32.xlu0 %v3854_v46, 352 }
 0x207   : > { %548 = vbcast.lane.b32.xlu1 %v3859_v48, 344  ;;  %552 = vbcast.lane.b32.xlu0 %v3859_v48, 352 }
 0x209   : > { %v308_v51 = vpop.permute.xlu1 %307  ;;  %v304_v52 = vpop.permute.xlu0 %303 }
 0x20a   : > { %v626_v53 = vmul.f32 %v308_v51, %v3816_v37  ;;  %v625_v54 = vmul.f32 %v304_v52, %v3816_v37 }
 0x20b   : > { %489 = vbcast.lane.b32.xlu1 %v3854_v46, 360  ;;  %493 = vbcast.lane.b32.xlu0 %v3854_v46, 368 }
 0x20c   : > { %v690_v55 = vsub.f32 %v308_v51, %v626_v53  ;;  %v754_v56 = vsub.f32 0.0, %v626_v53  ;;  %v689_v57 = vsub.f32 %v304_v52, %v625_v54  ;;  %v753_v58 = vsub.f32 0.0, %v625_v54 }
 0x20d   : > { %v371_v59 = vpop.permute.xlu1 %370  ;;  %v312_v60 = vpop.permute.xlu0 %311 }
 0x20e   : > { %v641_v61 = vmul.f32 %v371_v59, %v3821_v42  ;;  %v3905_v62 = vsel %vm585_vm1, %v689_v57, %v753_v58  ;;  %v3910_v63 = vsel %vm586_vm2, %v690_v55, %v754_v56  ;;  %v627_v1 = vmul.f32 %v312_v60, %v3816_v37 }
 0x20f   : > { %556 = vbcast.lane.b32.xlu1 %v3859_v48, 360  ;;  %560 = vbcast.lane.b32.xlu0 %v3859_v48, 368  ;;  %v3099_v0 = vpack.c.bf16 %v3910_v63, %v3905_v62 }
 0x210   : > { %v705_v4 = vsub.f32 %v371_v59, %v641_v61  ;;  %v769_v5 = vsub.f32 0.0, %v641_v61  ;;  %v691_v11 = vsub.f32 %v312_v60, %v627_v1  ;;  %v755_v15 = vsub.f32 0.0, %v627_v1 }
 0x211   : > { %v375_v2 = vpop.permute.xlu1 %374  ;;  %3100 = vmatprep.subr.bf16.mxu0 %v3099_v0  ;;  %v379_v3 = vpop.permute.xlu0 %378  ;;  %v4000_v1 = vadd.s32 56, %v3808_v32 }
 0x212   : > { %v642_v6 = vmul.f32 %v375_v2, %v3821_v42  ;;  %3102 = vmatpush3.bf16.msra.mxu0 %v3099_v0  ;;  %v643_v12 = vmul.f32 %v379_v3, %v3821_v42  ;;  %v3930_v17 = vsel %vm585_vm1, %v705_v4, %v769_v5  ;;  %v3949_v28 = vsel %vm587_vm3, %v691_v11, %v755_v15 }
 0x213   : > { %497 = vbcast.lane.b32.xlu1 %v3854_v46, 376  ;;  %v3997_v0 = vadd.s32 48, %v3808_v32  ;;  %vm592_vm8 = vcmp.eq.s32.totalorder %v4000_v1, %v3891_v50 }
 0x214   : > { %v706_v9 = vsub.f32 %v375_v2, %v642_v6  ;;  %v770_v10 = vsub.f32 0.0, %v642_v6  ;;  %v707_v22 = vsub.f32 %v379_v3, %v643_v12  ;;  %v771_v23 = vsub.f32 0.0, %v643_v12 }
 0x215   : > { %v316_v13 = vpop.permute.xlu1 %315  ;;  %v320_v14 = vpop.permute.xlu0 %319  ;;  %vm591_vm7 = vcmp.eq.s32.totalorder %v3997_v0, %v3891_v50 }
 0x216   : > { %v628_v16 = vmul.f32 %v316_v13, %v3816_v37  ;;  %v3935_v18 = vsel %vm586_vm2, %v706_v9, %v770_v10  ;;  %v629_v26 = vmul.f32 %v320_v14, %v3816_v37  ;;  %v3968_v40 = vsel %vm587_vm3, %v707_v22, %v771_v23 }
 0x217   : > { %564 = vbcast.lane.b32.xlu1 %v3859_v48, 376  ;;  %v3131_v19 = vpack.c.bf16 %v3935_v18, %v3930_v17 }
 0x218   : > { %v692_v20 = vsub.f32 %v316_v13, %v628_v16  ;;  %v756_v21 = vsub.f32 0.0, %v628_v16  ;;  %v693_v41 = vsub.f32 %v320_v14, %v629_v26  ;;  %v757_v43 = vsub.f32 0.0, %v629_v26 }
 0x219   : > { %3132 = vmatprep.subr.bf16.mxu1 %v3131_v19  ;;  %v383_v24 = vpop.permute.xlu1 %382  ;;  %v387_v25 = vpop.permute.xlu0 %386 }
 0x21a   : > { %v644_v27 = vmul.f32 %v383_v24, %v3821_v42  ;;  %3134 = vmatpush3.bf16.msra.mxu1 %v3131_v19  ;;  %v3954_v29 = vsel %vm588_vm4, %v692_v20, %v756_v21  ;;  %v645_v36 = vmul.f32 %v387_v25, %v3821_v42  ;;  %v3987_v59 = vsel %vm589_vm5, %v693_v41, %v757_v43 }
 0x21b   : > { %v3103_v30 = vpack.c.bf16 %v3954_v29, %v3949_v28 }
 0x21c   : > { %v708_v34 = vsub.f32 %v383_v24, %v644_v27  ;;  %v772_v35 = vsub.f32 0.0, %v644_v27  ;;  %v709_v53 = vsub.f32 %v387_v25, %v645_v36  ;;  %v773_v54 = vsub.f32 0.0, %v645_v36 }
 0x21d   : > { %v324_v38 = vpop.permute.xlu1 %323  ;;  %3104 = vmatprep.subr.bf16.mxu0 %v3103_v30  ;;  %v328_v39 = vpop.permute.xlu0 %327 }
 0x21e   : > { %v630_v44 = vmul.f32 %v324_v38, %v3816_v37  ;;  %3106 = vmatpush3.bf16.msra.mxu0 %v3103_v30  ;;  %v3974_v45 = vsel %vm588_vm4, %v708_v34, %v772_v35  ;;  %v631_v57 = vmul.f32 %v328_v39, %v3816_v37  ;;  %v4006_v9 = vsel %vm589_vm5, %v709_v53, %v773_v54 }
 0x21f   : > { %v3135_v47 = vpack.c.bf16 %v3974_v45, %v3968_v40  ;;  %v4035_v30 = vadd.s32 64, %v3808_v32  ;;  %v4038_v34 = vadd.s32 72, %v3808_v32 }
 0x220   : > { %v694_v51 = vsub.f32 %v324_v38, %v630_v44  ;;  %v758_v52 = vsub.f32 0.0, %v630_v44  ;;  %v695_v10 = vsub.f32 %v328_v39, %v631_v57  ;;  %v759_v11 = vsub.f32 0.0, %v631_v57 }
 0x221   : > { %v391_v55 = vpop.permute.xlu1 %390  ;;  %3136 = vmatprep.subr.bf16.mxu1 %v3135_v47  ;;  %v395_v56 = vpop.permute.xlu0 %394  ;;  %vm593_vm9 = vcmp.eq.s32.totalorder %v4035_v30, %v3891_v50  ;;  %vm594_vm10 = vcmp.eq.s32.totalorder %v4038_v34, %v3891_v50 }
 0x222   : > { %v646_v58 = vmul.f32 %v391_v55, %v3821_v42  ;;  %3138 = vmatpush3.bf16.msra.mxu1 %v3135_v47  ;;  %v3992_v60 = vsel %vm590_vm6, %v694_v51, %v758_v52  ;;  %v647_v4 = vmul.f32 %v395_v56, %v3821_v42  ;;  %v4025_v25 = vsel %vm591_vm7, %v695_v10, %v759_v11 }
 0x223   : > { %v3107_v61 = vpack.c.bf16 %v3992_v60, %v3987_v59  ;;  %v4073_v10 = vadd.s32 80, %v3808_v32  ;;  %v4076_v11 = vadd.s32 88, %v3808_v32 }
 0x224   : > { %v710_v2 = vsub.f32 %v391_v55, %v646_v58  ;;  %v774_v3 = vsub.f32 0.0, %v646_v58  ;;  %v711_v19 = vsub.f32 %v395_v56, %v647_v4  ;;  %v775_v20 = vsub.f32 0.0, %v647_v4 }
 0x225   : > { %v332_v5 = vpop.permute.xlu1 %331  ;;  %3108 = vmatprep.subr.bf16.mxu0 %v3107_v61  ;;  %v336_v6 = vpop.permute.xlu0 %335  ;;  %vm595_vm11 = vcmp.eq.s32.totalorder %v4073_v10, %v3891_v50  ;;  %vm596_vm12 = vcmp.eq.s32.totalorder %v4076_v11, %v3891_v50 }
 0x226   : > { %v632_v12 = vmul.f32 %v332_v5, %v3816_v37  ;;  %3110 = vmatpush3.bf16.msra.mxu0 %v3107_v61  ;;  %v4012_v13 = vsel %vm590_vm6, %v710_v2, %v774_v3  ;;  %v633_v23 = vmul.f32 %v336_v6, %v3816_v37  ;;  %v4044_v43 = vsel %vm591_vm7, %v711_v19, %v775_v20 }
 0x227   : > { %v3139_v14 = vpack.c.bf16 %v4012_v13, %v4006_v9 }
 0x228   : > { %v696_v15 = vsub.f32 %v332_v5, %v632_v12  ;;  %v760_v16 = vsub.f32 0.0, %v632_v12  ;;  %v697_v44 = vsub.f32 %v336_v6, %v633_v23  ;;  %v761_v47 = vsub.f32 0.0, %v633_v23 }
 0x229   : > { %v399_v21 = vpop.permute.xlu1 %398  ;;  %3140 = vmatprep.subr.bf16.mxu1 %v3139_v14  ;;  %v403_v22 = vpop.permute.xlu0 %402 }
 0x22a   : > { %v648_v24 = vmul.f32 %v399_v21, %v3821_v42  ;;  %3142 = vmatpush3.bf16.msra.mxu1 %v3139_v14  ;;  %v4030_v26 = vsel %vm592_vm8, %v696_v15, %v760_v16  ;;  %v649_v38 = vmul.f32 %v403_v22, %v3821_v42  ;;  %v4063_v4 = vsel %vm593_vm9, %v697_v44, %v761_v47 }
 0x22b   : > { %v3111_v27 = vpack.c.bf16 %v4030_v26, %v4025_v25 }
 0x22c   : > { %v712_v35 = vsub.f32 %v399_v21, %v648_v24  ;;  %v776_v36 = vsub.f32 0.0, %v648_v24  ;;  %v713_v56 = vsub.f32 %v403_v22, %v649_v38  ;;  %v777_v57 = vsub.f32 0.0, %v649_v38 }
 0x22d   : > { %v340_v39 = vpop.permute.xlu1 %339  ;;  %3112 = vmatprep.subr.bf16.mxu0 %v3111_v27  ;;  %v344_v41 = vpop.permute.xlu0 %343 }
 0x22e   : > { %v634_v51 = vmul.f32 %v340_v39, %v3816_v37  ;;  %3114 = vmatpush3.bf16.msra.mxu0 %v3111_v27  ;;  %v4050_v52 = vsel %vm592_vm8, %v712_v35, %v776_v36  ;;  %v635_v2 = vmul.f32 %v344_v41, %v3816_v37  ;;  %v4082_v20 = vsel %vm593_vm9, %v713_v56, %v777_v57 }
 0x22f   : > { %v3143_v53 = vpack.c.bf16 %v4050_v52, %v4044_v43  ;;  %v4111_v56 = vadd.s32 96, %v3808_v32  ;;  %v4114_v57 = vadd.s32 104, %v3808_v32 }
 0x230   : > { %v698_v54 = vsub.f32 %v340_v39, %v634_v51  ;;  %v762_v55 = vsub.f32 0.0, %v634_v51  ;;  %v699_v21 = vsub.f32 %v344_v41, %v635_v2  ;;  %v763_v22 = vsub.f32 0.0, %v635_v2 }
 0x231   : > { %v407_v58 = vpop.permute.xlu1 %406  ;;  %3144 = vmatprep.subr.bf16.mxu1 %v3143_v53  ;;  %v411_v61 = vpop.permute.xlu0 %410  ;;  %vm597_vm13 = vcmp.eq.s32.totalorder %v4111_v56, %v3891_v50  ;;  %vm598_vm14 = vcmp.eq.s32.totalorder %v4114_v57, %v3891_v50 }
 0x232   : > { %v650_v3 = vmul.f32 %v407_v58, %v3821_v42  ;;  %3146 = vmatpush3.bf16.msra.mxu1 %v3143_v53  ;;  %v4068_v5 = vsel %vm594_vm10, %v698_v54, %v762_v55  ;;  %v651_v15 = vmul.f32 %v411_v61, %v3821_v42  ;;  %v4101_v53 = vsel %vm595_vm11, %v699_v21, %v763_v22 }
 0x233   : > { %v3115_v6 = vpack.c.bf16 %v4068_v5, %v4063_v4 }
 0x234   : > { %v714_v12 = vsub.f32 %v407_v58, %v650_v3  ;;  %v778_v14 = vsub.f32 0.0, %v650_v3  ;;  %v715_v38 = vsub.f32 %v411_v61, %v651_v15  ;;  %v779_v39 = vsub.f32 0.0, %v651_v15 }
 0x235   : > { %v348_v16 = vpop.permute.xlu1 %347  ;;  %3116 = vmatprep.subr.bf16.mxu0 %v3115_v6  ;;  %v352_v19 = vpop.permute.xlu0 %351 }
 0x236   : > { %v636_v23 = vmul.f32 %v348_v16, %v3816_v37  ;;  %3118 = vmatpush3.bf16.msra.mxu0 %v3115_v6  ;;  %v4088_v24 = vsel %vm594_vm10, %v714_v12, %v778_v14  ;;  %v637_v47 = vmul.f32 %v352_v19, %v3816_v37  ;;  %v4120_v12 = vsel %vm595_vm11, %v715_v38, %v779_v39 }
 0x237   : > { %v3147_v27 = vpack.c.bf16 %v4088_v24, %v4082_v20  ;;  %4756 = vst [vmem:[#allocation14_spill] sm:$0xff] %v4120_v12 }
 0x238   : > { %v700_v35 = vsub.f32 %v348_v16, %v636_v23  ;;  %v764_v36 = vsub.f32 0.0, %v636_v23  ;;  %v701_v14 = vsub.f32 %v352_v19, %v637_v47  ;;  %v765_v15 = vsub.f32 0.0, %v637_v47 }
 0x239   : > { %v415_v41 = vpop.permute.xlu1 %414  ;;  %3148 = vmatprep.subr.bf16.mxu1 %v3147_v27  ;;  %v419_v44 = vpop.permute.xlu0 %418 }
 0x23a   : > { %v652_v51 = vmul.f32 %v415_v41, %v3821_v42  ;;  %3150 = vmatpush3.bf16.msra.mxu1 %v3147_v27  ;;  %v4106_v54 = vsel %vm596_vm12, %v700_v35, %v764_v36  ;;  %v653_v2 = vmul.f32 %v419_v44, %v3821_v42  ;;  %v4139_v47 = vsel %vm597_vm13, %v701_v14, %v765_v15 }
 0x23b   : > { %v3119_v55 = vpack.c.bf16 %v4106_v54, %v4101_v53  ;;  %4758 = vst [vmem:[#allocation16_spill] sm:$0xff] %v4139_v47 }
 0x23c   : > { %v716_v58 = vsub.f32 %v415_v41, %v652_v51  ;;  %v780_v61 = vsub.f32 0.0, %v652_v51  ;;  %v717_v27 = vsub.f32 %v419_v44, %v653_v2  ;;  %v781_v35 = vsub.f32 0.0, %v653_v2 }
 0x23d   : > { %v356_v3 = vpop.permute.xlu1 %355  ;;  %3120 = vmatprep.subr.bf16.mxu0 %v3119_v55  ;;  %v360_v6 = vpop.permute.xlu0 %359 }
 0x23e   : > { %v638_v16 = vmul.f32 %v356_v3, %v3816_v37  ;;  %3122 = vmatpush3.bf16.msra.mxu0 %v3119_v55  ;;  %v4126_v21 = vsel %vm596_vm12, %v716_v58, %v780_v61  ;;  %v639_v39 = vmul.f32 %v360_v6, %v3816_v37  ;;  %v4149_v55 = vadd.s32 112, %v3808_v32 }
 0x23f   : > { %4757 = vst [vmem:[#allocation15_spill] sm:$0xff] %v4126_v21  ;;  %v3151_v22 = vpack.c.bf16 %v4126_v21, %v4120_v12  ;;  %v4152_v58 = vadd.s32 120, %v3808_v32 }
 0x240   : > { %v702_v23 = vsub.f32 %v356_v3, %v638_v16  ;;  %v766_v19 = vsub.f32 0.0, %v638_v16  ;;  %v4158_v16 = vsel %vm597_vm13, %v717_v27, %v781_v35  ;;  %vm599_vm15 = vcmp.eq.s32.totalorder %v4149_v55, %v3891_v50  ;;  %v948_v55 = vld [vmem:[%s3793_s10 + $0x118] sm:$0xff] }
 0x241   : > { %v423_v36 = vpop.permute.xlu1 %422  ;;  %3152 = vmatprep.subr.bf16.mxu1 %v3151_v22  ;;  %v427_v38 = vpop.permute.xlu0 %426  ;;  %4760 = vst [vmem:[#allocation18_spill] sm:$0xff] %v4158_v16  ;;  %vm600_vm0 = vcmp.eq.s32.totalorder %v4152_v58, %v3891_v50  ;;  %v963_v50 = vld [vmem:[%s3793_s10 + $0x190] sm:$0xff]  ;;  %v950_v58 = vld [vmem:[%s3793_s10 + $0x128] sm:$0xff] }
 0x242   : > { %v654_v41 = vmul.f32 %v423_v36, %v3821_v42  ;;  %3154 = vmatpush3.bf16.msra.mxu1 %v3151_v22  ;;  %v4144_v51 = vsel %vm598_vm14, %v702_v23, %v766_v19  ;;  %v655_v3 = vmul.f32 %v427_v38, %v3821_v42  ;;  %v703_v22 = vsub.f32 %v360_v6, %v639_v39 }
 0x243   : > { %4759 = vst [vmem:[#allocation17_spill] sm:$0xff] %v4144_v51  ;;  %v3123_v44 = vpack.c.bf16 %v4144_v51, %v4139_v47  ;;  %v767_v23 = vsub.f32 0.0, %v639_v39 }
 0x244   : > { %v718_v61 = vsub.f32 %v423_v36, %v654_v41  ;;  %v782_v2 = vsub.f32 0.0, %v654_v41  ;;  %v719_v35 = vsub.f32 %v427_v38, %v655_v3  ;;  %v783_v39 = vsub.f32 0.0, %v655_v3 }
 0x245   : > { %v364_v14 = vpop.permute.xlu1 %363  ;;  %3124 = vmatprep.subr.bf16.mxu0 %v3123_v44  ;;  %v438_v15 = vpop.permute.xlu0 %437 }
 0x246   : > { %v640_v19 = vmul.f32 %v364_v14, %v3816_v37  ;;  %3126 = vmatpush3.bf16.msra.mxu0 %v3123_v44  ;;  %v4164_v36 = vsel %vm598_vm14, %v718_v61, %v782_v2  ;;  %v657_v21 = vmul.f32 %v438_v15, %v3854_v46  ;;  %v4177_v2 = vsel %vm599_vm15, %v703_v22, %v767_v23 }
 0x247   : > { %4761 = vst [vmem:[#allocation19_spill] sm:$0xff] %v4164_v36  ;;  %v3155_v41 = vpack.c.bf16 %v4164_v36, %v4158_v16  ;;  %4762 = vst [vmem:[#allocation20_spill] sm:$0xff] %v4177_v2  ;;  %v4190_v22 = vsel %vm599_vm15, %v719_v35, %v783_v39 }
 0x248   : > { %v704_v27 = vsub.f32 %v364_v14, %v640_v19  ;;  %v768_v6 = vsub.f32 0.0, %v640_v19  ;;  %4764 = vst [vmem:[#allocation22_spill] sm:$0xff] %v4190_v22  ;;  %v721_v23 = vsub.f32 %v438_v15, %v657_v21  ;;  %v785_v16 = vsub.f32 0.0, %v657_v21 }
 0x249   : > { %v431_v37 = vpop.permute.xlu1 %430  ;;  %3156 = vmatprep.subr.bf16.mxu1 %v3155_v41  ;;  %v505_v44 = vpop.permute.xlu0 %504 }
 0x24a   : > { %v656_v61 = vmul.f32 %v431_v37, %v3821_v42  ;;  %3158 = vmatpush3.bf16.msra.mxu1 %v3155_v41  ;;  %v4182_v14 = vsel %vm600_vm0, %v704_v27, %v768_v6  ;;  %v673_v42 = vmul.f32 %v505_v44, %v3859_v48  ;;  %v914_v6 = vld [vmem:[%s3793_s10 + $0x8] sm:$0xff] }
 0x24b   : > { %4763 = vst [vmem:[#allocation21_spill] sm:$0xff] %v4182_v14  ;;  %v3127_v38 = vpack.c.bf16 %v4182_v14, %v4177_v2  ;;  %v915_v14 = vld [vmem:[%s3793_s10 + $0x10] sm:$0xff] }
 0x24c   : > { %v720_v3 = vsub.f32 %v431_v37, %v656_v61  ;;  %v784_v19 = vsub.f32 0.0, %v656_v61  ;;  %v737_v15 = vsub.f32 %v505_v44, %v673_v42  ;;  %v801_v21 = vsub.f32 0.0, %v673_v42 }
 0x24d   : > { %v442_v36 = vpop.permute.xlu1 %441  ;;  %3128 = vmatprep.subr.bf16.mxu0 %v3127_v38  ;;  %v446_v41 = vpop.permute.xlu0 %445 }
 0x24e   : > { %v658_v27 = vmul.f32 %v442_v36, %v3854_v46  ;;  %3130 = vmatpush3.bf16.msra.mxu0 %v3127_v38  ;;  %v4197_v37 = vsel %vm600_vm0, %v720_v3, %v784_v19  ;;  %v659_v39 = vmul.f32 %v446_v41, %v3854_v46  ;;  %v916_v19 = vld [vmem:[%s3793_s10 + $0x18] sm:$0xff] }
 0x24f   : > { %4765 = vst [vmem:[#allocation23_spill] sm:$0xff] %v4197_v37  ;;  %v3159_v61 = vpack.c.bf16 %v4197_v37, %v4190_v22  ;;  %v930_v37 = vld [vmem:[%s3793_s10 + $0x88] sm:$0xff] }
 0x250   : > { %v722_v2 = vsub.f32 %v442_v36, %v658_v27  ;;  %v786_v35 = vsub.f32 0.0, %v658_v27  ;;  %v4211_v36 = vsel %vm585_vm1, %v721_v23, %v785_v16  ;;  %v917_v27 = vld [vmem:[%s3793_s10 + $0x20] sm:$0xff]  ;;  %v723_v22 = vsub.f32 %v446_v41, %v659_v39  ;;  %v918_v41 = vld [vmem:[%s3793_s10 + $0x28] sm:$0xff] }
 0x251   : > { %v509_v38 = vpop.permute.xlu1 %508  ;;  %2684 = vmatmul.mubr.f32.vlgmr.msra.gmra.mrb[0].mxu0 %v914_v6  ;;  %3160 = vmatprep.subr.bf16.mxu1 %v3159_v61  ;;  %v4203_v51 = vpop.permute.xlu0 %512  ;;  %v787_v12 = vsub.f32 0.0, %v659_v39  ;;  %v932_v39 = vld [vmem:[%s3793_s10 + $0x98] sm:$0xff] }
 0x252   : > { %v674_v3 = vmul.f32 %v509_v38, %v3859_v48  ;;  %3162 = vmatpush3.bf16.msra.mxu1 %v3159_v61  ;;  %2686 = vmatprep.mubr.f32.mxu0 %v915_v14  ;;  %v4216_v44 = vsel %vm586_vm2, %v722_v2, %v786_v35  ;;  %v931_v61 = vld [vmem:[%s3793_s10 + $0x90] sm:$0xff]  ;;  %v4227_v2 = vsel %vm585_vm1, %v737_v15, %v801_v21 }
 0x253   : > { %4766 = vst [vmem:[#allocation24_spill] sm:$0xff] %v4216_v44  ;;  %v3163_v42 = vpack.c.bf16 %v4216_v44, %v4211_v36  ;;  %v675_v23 = vmul.f32 %v4203_v51, %v3859_v48  ;;  %v919_v15 = vld [vmem:[%s3793_s10 + $0x30] sm:$0xff] }
 0x254   : > { %v738_v6 = vsub.f32 %v509_v38, %v674_v3  ;;  %v802_v14 = vsub.f32 0.0, %v674_v3  ;;  %v933_v3 = vld [vmem:[%s3793_s10 + $0xa0] sm:$0xff] }
 0x255   : > { %v450_v47 = vpop.permute.xlu1 %449  ;;  %2687 = vmatmul.mubr.f32.gmra.mrb[2].mxu0 %v916_v19  ;;  %2740 = vmatmul.mubr.f32.vlgmr.msra.gmra.mrb[0].mxu1 %v930_v37  ;;  %v4222_v16 = vpop.permute.xlu0 %453 }
 0x256   : > { %v660_v35 = vmul.f32 %v450_v47, %v3854_v46  ;;  %3164 = vmatprep.subr.bf16.mxu0 %v3163_v42  ;;  %2689 = vmatprep.mubr.f32.mxu0 %v917_v27  ;;  %v4237_v37 = vsel %vm586_vm2, %v738_v6, %v802_v14  ;;  %v661_v19 = vmul.f32 %v4222_v16, %v3854_v46 }
 0x257   : > { %4767 = vst [vmem:[#allocation25_spill] sm:$0xff] %v4237_v37  ;;  %3166 = vmatpush3.bf16.msra.mxu0 %v3163_v42  ;;  %2742 = vmatprep.mubr.f32.mxu1 %v931_v61  ;;  %v3195_v32 = vpack.c.bf16 %v4237_v37, %v4227_v2  ;;  %v4250_v42 = vsel %vm587_vm3, %v723_v22, %v787_v12  ;;  %v920_v61 = vld [vmem:[%s3793_s10 + $0x38] sm:$0xff] }
 0x258   : > { %v724_v21 = vsub.f32 %v450_v47, %v660_v35  ;;  %v788_v38 = vsub.f32 0.0, %v660_v35  ;;  %v739_v6 = vsub.f32 %v4203_v51, %v675_v23  ;;  %v803_v47 = vsub.f32 0.0, %v675_v23  ;;  %v934_v35 = vld [vmem:[%s3793_s10 + $0xa8] sm:$0xff]  ;;  %v921_v51 = vld [vmem:[%s3793_s10 + $0x40] sm:$0xff] }
 0x259   : > { %v517_v27 = vpop.permute.xlu1 %516  ;;  %2690 = vmatmul.mubr.f32.gmra.mrb[4].mxu0 %v918_v41  ;;  %2743 = vmatmul.mubr.f32.gmra.mrb[2].mxu1 %v932_v39  ;;  %v4245_v49 = vpop.permute.xlu0 %520  ;;  %v935_v39 = vld [vmem:[%s3793_s10 + $0xb0] sm:$0xff]  ;;  %v789_v37 = vsub.f32 0.0, %v661_v19 }
 0x25a   : > { %v676_v14 = vmul.f32 %v517_v27, %v3859_v48  ;;  %3196 = vmatprep.subr.bf16.mxu1 %v3195_v32  ;;  %2692 = vmatprep.mubr.f32.mxu0 %v919_v15  ;;  %v4259_v41 = vsel %vm588_vm4, %v724_v21, %v788_v38  ;;  %v725_v15 = vsub.f32 %v4222_v16, %v661_v19 }
 0x25b   : > { %4768 = vst [vmem:[#allocation26_spill] sm:$0xff] %v4259_v41  ;;  %3198 = vmatpush3.bf16.msra.mxu1 %v3195_v32  ;;  %2745 = vmatprep.mubr.f32.mxu1 %v933_v3  ;;  %v3167_v12 = vpack.c.bf16 %v4259_v41, %v4250_v42  ;;  %v677_v44 = vmul.f32 %v4245_v49, %v3859_v48  ;;  %v922_v3 = vld [vmem:[%s3793_s10 + $0x48] sm:$0xff]  ;;  %v937_v41 = vld [vmem:[%s3793_s10 + $0xc0] sm:$0xff] }
 0x25c   : > { %v740_v22 = vsub.f32 %v517_v27, %v676_v14  ;;  %v804_v23 = vsub.f32 0.0, %v676_v14  ;;  %v936_v27 = vld [vmem:[%s3793_s10 + $0xb8] sm:$0xff]  ;;  %v4276_v16 = vsel %vm587_vm3, %v739_v6, %v803_v47 }
 0x25d   : > { %v458_v21 = vpop.permute.xlu1 %457  ;;  %2693 = vmatmul.mubr.f32.gmra.mrb[6].mxu0 %v920_v61  ;;  %2746 = vmatmul.mubr.f32.gmra.mrb[4].mxu1 %v934_v35  ;;  %v4268_v32 = vpop.permute.xlu0 %461  ;;  %v923_v61 = vld [vmem:[%s3793_s10 + $0x50] sm:$0xff]  ;;  %v741_v7 = vsub.f32 %v4245_v49, %v677_v44  ;;  %v805_v6 = vsub.f32 0.0, %v677_v44  ;;  %v924_v44 = vld [vmem:[%s3793_s10 + $0x58] sm:$0xff]  ;;  %v938_v49 = vld [vmem:[%s3793_s10 + $0xc8] sm:$0xff] }
 0x25e   : > { %v662_v38 = vmul.f32 %v458_v21, %v3854_v46  ;;  %3168 = vmatprep.subr.bf16.mxu0 %v3167_v12  ;;  %2695 = vmatprep.mubr.f32.mxu0 %v921_v51  ;;  %v4281_v19 = vsel %vm588_vm4, %v740_v22, %v804_v23  ;;  %v663_v22 = vmul.f32 %v4268_v32, %v3854_v46 }
 0x25f   : > { %4769 = vst [vmem:[#allocation27_spill] sm:$0xff] %v4281_v19  ;;  %3170 = vmatpush3.bf16.msra.mxu0 %v3167_v12  ;;  %2748 = vmatprep.mubr.f32.mxu1 %v935_v39  ;;  %v3199_v14 = vpack.c.bf16 %v4281_v19, %v4276_v16  ;;  %v4293_v12 = vsel %vm589_vm5, %v725_v15, %v789_v37  ;;  %v925_v15 = vld [vmem:[%s3793_s10 + $0x60] sm:$0xff]  ;;  %v940_v19 = vld [vmem:[%s3793_s10 + $0xd8] sm:$0xff] }
 0x260   : > { %v726_v35 = vsub.f32 %v458_v21, %v662_v38  ;;  %v790_v51 = vsub.f32 0.0, %v662_v38 }
 0x261   : > { %v525_v47 = vpop.permute.xlu1 %524  ;;  %2696 = vmatmul.mubr.f32.gmra.mrb[8].mxu0 %v922_v3  ;;  %2749 = vmatmul.mubr.f32.gmra.mrb[6].mxu1 %v936_v27  ;;  %v4288_v8 = vpop.permute.xlu0 %528  ;;  %v939_v3 = vld [vmem:[%s3793_s10 + $0xd0] sm:$0xff] }
 0x262   : > { %v678_v23 = vmul.f32 %v525_v47, %v3859_v48  ;;  %3200 = vmatprep.subr.bf16.mxu1 %v3199_v14  ;;  %2698 = vmatprep.mubr.f32.mxu0 %v923_v61  ;;  %v4303_v39 = vsel %vm590_vm6, %v726_v35, %v790_v51  ;;  %v679_v27 = vmul.f32 %v4288_v8, %v3859_v48  ;;  %v791_v51 = vsub.f32 0.0, %v663_v22 }
 0x263   : > { %4770 = vst [vmem:[#allocation28_spill] sm:$0xff] %v4303_v39  ;;  %3202 = vmatpush3.bf16.msra.mxu1 %v3199_v14  ;;  %2751 = vmatprep.mubr.f32.mxu1 %v937_v41  ;;  %v3171_v37 = vpack.c.bf16 %v4303_v39, %v4293_v12  ;;  %v4316_v41 = vsel %vm589_vm5, %v741_v7, %v805_v6 }
 0x264   : > { %v742_v21 = vsub.f32 %v525_v47, %v678_v23  ;;  %v806_v38 = vsub.f32 0.0, %v678_v23  ;;  %4771 = vst [vmem:[#allocation29_spill] sm:$0xff] %v4316_v41  ;;  %v727_v14 = vsub.f32 %v4268_v32, %v663_v22  ;;  %v926_v23 = vld [vmem:[%s3793_s10 + $0x68] sm:$0xff]  ;;  %v927_v32 = vld [vmem:[%s3793_s10 + $0x70] sm:$0xff]  ;;  %v941_v22 = vld [vmem:[%s3793_s10 + $0xe0] sm:$0xff] }
 0x265   : > { %v466_v61 = vpop.permute.xlu1 %465  ;;  %2699 = vmatmul.mubr.f32.gmra.mrb[10].mxu0 %v924_v44  ;;  %2752 = vmatmul.mubr.f32.gmra.mrb[8].mxu1 %v938_v49  ;;  %v4311_v35 = vpop.permute.xlu0 %469  ;;  %v743_v49 = vsub.f32 %v4288_v8, %v679_v27 }
 0x266   : > { %v664_v47 = vmul.f32 %v466_v61, %v3854_v46  ;;  %3172 = vmatprep.subr.bf16.mxu0 %v3171_v37  ;;  %2701 = vmatprep.mubr.f32.mxu0 %v925_v15  ;;  %v4325_v44 = vsel %vm590_vm6, %v742_v21, %v806_v38  ;;  %v807_v15 = vsub.f32 0.0, %v679_v27  ;;  %v665_v33 = vmul.f32 %v4311_v35, %v3854_v46 }
 0x267   : > { %4772 = vst [vmem:[#allocation30_spill] sm:$0xff] %v4325_v44  ;;  %3174 = vmatpush3.bf16.msra.mxu0 %v3171_v37  ;;  %2754 = vmatprep.mubr.f32.mxu1 %v939_v3  ;;  %v3203_v31 = vpack.c.bf16 %v4325_v44, %v4316_v41  ;;  %v928_v3 = vld [vmem:[%s3793_s10 + $0x78] sm:$0xff]  ;;  %v4340_v8 = vsel %vm591_vm7, %v727_v14, %v791_v51  ;;  %v945_v44 = vld [vmem:[%s3793_s10 + $0x100] sm:$0xff] }
 0x268   : > { %v728_v7 = vsub.f32 %v466_v61, %v664_v47  ;;  %v792_v6 = vsub.f32 0.0, %v664_v47  ;;  %v942_v61 = vld [vmem:[%s3793_s10 + $0xe8] sm:$0xff]  ;;  %v943_v47 = vld [vmem:[%s3793_s10 + $0xf0] sm:$0xff]  ;;  %v729_v41 = vsub.f32 %v4311_v35, %v665_v33  ;;  %v793_v39 = vsub.f32 0.0, %v665_v33 }
 0x269   : > { %v533_v21 = vpop.permute.xlu1 %532  ;;  %2702 = vmatmul.mubr.f32.gmra.mrb[12].mxu0 %v926_v23  ;;  %2755 = vmatmul.mubr.f32.gmra.mrb[10].mxu1 %v940_v19  ;;  %v537_v37 = vpop.permute.xlu0 %536 }
 0x26a   : > { %v680_v38 = vmul.f32 %v533_v21, %v3859_v48  ;;  %3204 = vmatprep.subr.bf16.mxu1 %v3203_v31  ;;  %2704 = vmatprep.mubr.f32.mxu0 %v927_v32  ;;  %v4345_v27 = vsel %vm592_vm8, %v728_v7, %v792_v6  ;;  %v681_v7 = vmul.f32 %v537_v37, %v3859_v48 }
 0x26b   : > { %3206 = vmatpush3.bf16.msra.mxu1 %v3203_v31  ;;  %2757 = vmatprep.mubr.f32.mxu1 %v941_v22  ;;  %v3175_v19 = vpack.c.bf16 %v4345_v27, %v4340_v8  ;;  %v4355_v31 = vsel %vm591_vm7, %v743_v49, %v807_v15  ;;  %v944_v22 = vld [vmem:[%s3793_s10 + $0xf8] sm:$0xff]  ;;  %v961_v15 = vld [vmem:[%s3793_s10 + $0x180] sm:$0xff]  ;;  %v4372_v1 = vsel %vm593_vm9, %v729_v41, %v793_v39 }
 0x26c   : > { %v744_v23 = vsub.f32 %v533_v21, %v680_v38  ;;  %v808_v32 = vsub.f32 0.0, %v680_v38 }
 0x26d   : > { %v474_v14 = vpop.permute.xlu1 %473  ;;  %2705 = vmatmul.mubr.f32.gmra.mrb[14].mxu0 %v928_v3  ;;  %2758 = vmatmul.mubr.f32.gmra.mrb[12].mxu1 %v942_v61  ;;  %v478_v51 = vpop.permute.xlu0 %477  ;;  %v745_v61 = vsub.f32 %v537_v37, %v681_v7 }
 0x26e   : > { %v666_v6 = vmul.f32 %v474_v14, %v3854_v46  ;;  %3176 = vmatprep.subr.bf16.mxu0 %v3175_v19  ;;  %2760 = vmatprep.mubr.f32.mxu1 %v943_v47  ;;  %v4363_v35 = vsel %vm592_vm8, %v744_v23, %v808_v32  ;;  %v667_v21 = vmul.f32 %v478_v51, %v3854_v46 }
 0x26f   : > { %3178 = vmatpush3.bf16.msra.mxu0 %v3175_v19  ;;  %v3207_v33 = vpack.c.bf16 %v4363_v35, %v4355_v31  ;;  %2795 = vmatprep.mubr.f32.mxu0 %v945_v44  ;;  %v809_v19 = vsub.f32 0.0, %v681_v7 }
 0x270   : > { %v730_v0 = vsub.f32 %v474_v14, %v666_v6  ;;  %v794_v49 = vsub.f32 0.0, %v666_v6  ;;  %v731_v6 = vsub.f32 %v478_v51, %v667_v21 }
 0x271   : > { %v541_v38 = vpop.permute.xlu1 %540  ;;  %2761 = vmatmul.mubr.f32.gmra.mrb[14].mxu1 %v944_v22  ;;  %3208 = vmatprep.subr.bf16.mxu1 %v3207_v33  ;;  %v545_v3 = vpop.permute.xlu0 %544  ;;  %v795_v22 = vsub.f32 0.0, %v667_v21 }
 0x272   : > { %v682_v47 = vmul.f32 %v541_v38, %v3859_v48  ;;  %3210 = vmatpush3.bf16.msra.mxu1 %v3207_v33  ;;  %v4378_v44 = vsel %vm594_vm10, %v730_v0, %v794_v49  ;;  %2851 = vmatprep.mubr.f32.mxu1 %v961_v15  ;;  %v683_v37 = vmul.f32 %v545_v3, %v3859_v48 }
 0x273   : > { %v3179_v23 = vpack.c.bf16 %v4378_v44, %v4372_v1  ;;  %v4387_v33 = vsel %vm593_vm9, %v745_v61, %v809_v19  ;;  %v4400_v30 = vsel %vm595_vm11, %v731_v6, %v795_v22 }
 0x274   : > { %v746_v32 = vsub.f32 %v541_v38, %v682_v47  ;;  %v810_v14 = vsub.f32 0.0, %v682_v47  ;;  %4773 = vst [vmem:[#allocation31_spill] sm:$0xff] %v4387_v33  ;;  %v747_v61 = vsub.f32 %v545_v3, %v683_v37  ;;  %v811_v19 = vsub.f32 0.0, %v683_v37 }
 0x275   : > { %v482_v39 = vpop.permute.xlu1 %481  ;;  %3180 = vmatprep.subr.bf16.mxu0 %v3179_v23  ;;  %v486_v41 = vpop.permute.xlu0 %485 }
 0x276   : > { %v668_v7 = vmul.f32 %v482_v39, %v3854_v46  ;;  %3182 = vmatpush3.bf16.msra.mxu0 %v3179_v23  ;;  %v4392_v0 = vsel %vm594_vm10, %v746_v32, %v810_v14  ;;  %v669_v21 = vmul.f32 %v486_v41, %v3854_v46  ;;  %v4415_v37 = vsel %vm595_vm11, %v747_v61, %v811_v19 }
 0x277   : > { %4774 = vst [vmem:[#allocation32_spill] sm:$0xff] %v4392_v0  ;;  %v3211_v51 = vpack.c.bf16 %v4392_v0, %v4387_v33 }
 0x278   : > { %v732_v49 = vsub.f32 %v482_v39, %v668_v7  ;;  %v796_v15 = vsub.f32 0.0, %v668_v7  ;;  %v733_v7 = vsub.f32 %v486_v41, %v669_v21  ;;  %v797_v0 = vsub.f32 0.0, %v669_v21 }
 0x279   : > { %v549_v38 = vpop.permute.xlu1 %548  ;;  %3212 = vmatprep.subr.bf16.mxu1 %v3211_v51  ;;  %v553_v47 = vpop.permute.xlu0 %552 }
 0x27a   : > { %v684_v34 = vmul.f32 %v549_v38, %v3859_v48  ;;  %3214 = vmatpush3.bf16.msra.mxu1 %v3211_v51  ;;  %v4406_v23 = vsel %vm596_vm12, %v732_v49, %v796_v15  ;;  %v685_v3 = vmul.f32 %v553_v47, %v3859_v48  ;;  %v4428_v10 = vsel %vm597_vm13, %v733_v7, %v797_v0 }
 0x27b   : > { %v3183_v32 = vpack.c.bf16 %v4406_v23, %v4400_v30 }
 0x27c   : > { %v748_v14 = vsub.f32 %v549_v38, %v684_v34  ;;  %v812_v39 = vsub.f32 0.0, %v684_v34  ;;  %v749_v61 = vsub.f32 %v553_v47, %v685_v3  ;;  %v813_v19 = vsub.f32 0.0, %v685_v3 }
 0x27d   : > { %v490_v33 = vpop.permute.xlu1 %489  ;;  %3184 = vmatprep.subr.bf16.mxu0 %v3183_v32  ;;  %v494_v6 = vpop.permute.xlu0 %493 }
 0x27e   : > { %v670_v22 = vmul.f32 %v490_v33, %v3854_v46  ;;  %3186 = vmatpush3.bf16.msra.mxu0 %v3183_v32  ;;  %v4420_v51 = vsel %vm596_vm12, %v748_v14, %v812_v39  ;;  %v671_v21 = vmul.f32 %v494_v6, %v3854_v46  ;;  %v4443_v3 = vsel %vm597_vm13, %v749_v61, %v813_v19 }
 0x27f   : > { %4775 = vst [vmem:[#allocation33_spill] sm:$0xff] %v4420_v51  ;;  %v3215_v41 = vpack.c.bf16 %v4420_v51, %v4415_v37 }
 0x280   : > { %v734_v49 = vsub.f32 %v490_v33, %v670_v22  ;;  %v798_v15 = vsub.f32 0.0, %v670_v22  ;;  %v735_v22 = vsub.f32 %v494_v6, %v671_v21  ;;  %v799_v51 = vsub.f32 0.0, %v671_v21 }
 0x281   : > { %v557_v38 = vpop.permute.xlu1 %556  ;;  %3216 = vmatprep.subr.bf16.mxu1 %v3215_v41  ;;  %v561_v33 = vpop.permute.xlu0 %560 }
 0x282   : > { %v686_v11 = vmul.f32 %v557_v38, %v3859_v48  ;;  %3218 = vmatpush3.bf16.msra.mxu1 %v3215_v41  ;;  %v4434_v34 = vsel %vm598_vm14, %v734_v49, %v798_v15  ;;  %v687_v47 = vmul.f32 %v561_v33, %v3859_v48 }
 0x283   : > { %v3187_v32 = vpack.c.bf16 %v4434_v34, %v4428_v10 }
 0x284   : > { %v750_v14 = vsub.f32 %v557_v38, %v686_v11  ;;  %v814_v39 = vsub.f32 0.0, %v686_v11  ;;  %v751_v56 = vsub.f32 %v561_v33, %v687_v47  ;;  %v815_v38 = vsub.f32 0.0, %v687_v47  ;;  %v946_v33 = vld [vmem:[%s3793_s10 + $0x108] sm:$0xff]  ;;  %v964_v47 = vld [vmem:[%s3793_s10 + $0x198] sm:$0xff] }
 0x285   : > { %v498_v0 = vpop.permute.xlu1 %497  ;;  %3188 = vmatprep.subr.bf16.mxu0 %v3187_v32 }
 0x286   : > { %v672_v7 = vmul.f32 %v498_v0, %v3854_v46  ;;  %3190 = vmatpush3.bf16.msra.mxu0 %v3187_v32  ;;  %v4448_v41 = vsel %vm598_vm14, %v750_v14, %v814_v39  ;;  %v4455_v46 = vsel %vm599_vm15, %v735_v22, %v799_v51  ;;  %v947_v39 = vld [vmem:[%s3793_s10 + $0x110] sm:$0xff]  ;;  %v962_v22 = vld [vmem:[%s3793_s10 + $0x188] sm:$0xff] }
 0x287   : > { %v3219_v6 = vpack.c.bf16 %v4448_v41, %v4443_v3 }
 0x288   : > { %v736_v49 = vsub.f32 %v498_v0, %v672_v7  ;;  %v800_v15 = vsub.f32 0.0, %v672_v7  ;;  %v949_v0 = vld [vmem:[%s3793_s10 + $0x120] sm:$0xff]  ;;  %v951_v7 = vld [vmem:[%s3793_s10 + $0x130] sm:$0xff] }
 0x289   : > { %v565_v21 = vpop.permute.xlu1 %564  ;;  %3220 = vmatprep.subr.bf16.mxu1 %v3219_v6 }
 0x28a   : > { %v688_v57 = vmul.f32 %v565_v21, %v3859_v48  ;;  %3222 = vmatpush3.bf16.msra.mxu1 %v3219_v6  ;;  %v4461_v61 = vsel %vm600_vm0, %v736_v49, %v800_v15  ;;  %v4469_v48 = vsel %vm599_vm15, %v751_v56, %v815_v38  ;;  %v965_v6 = vld [vmem:[%s3793_s10 + $0x1a0] sm:$0xff]  ;;  %v952_v49 = vld [vmem:[%s3793_s10 + $0x138] sm:$0xff]  ;;  %v966_v15 = vld [vmem:[%s3793_s10 + $0x1a8] sm:$0xff] }
 0x28b   : > { %v3191_v19 = vpack.c.bf16 %v4461_v61, %v4455_v46  ;;  %v967_v56 = vld [vmem:[%s3793_s10 + $0x1b0] sm:$0xff]  ;;  %v954_v38 = vld [vmem:[%s3793_s10 + $0x148] sm:$0xff] }
 0x28c   : > { %v752_v11 = vsub.f32 %v565_v21, %v688_v57  ;;  %v816_v51 = vsub.f32 0.0, %v688_v57  ;;  %v953_v21 = vld [vmem:[%s3793_s10 + $0x140] sm:$0xff]  ;;  %v968_v57 = vld [vmem:[%s3793_s10 + $0x1b8] sm:$0xff] }
 0x28d   : > { %3192 = vmatprep.subr.bf16.mxu0 %v3191_v19 }
 0x28e   : > { %3194 = vmatpush3.bf16.msra.mxu0 %v3191_v19  ;;  %v4474_v32 = vsel %vm600_vm0, %v752_v11, %v816_v51  ;;  %v955_v19 = vld [vmem:[%s3793_s10 + $0x150] sm:$0xff]  ;;  %v969_v11 = vld [vmem:[%s3793_s10 + $0x1c0] sm:$0xff]  ;;  %v956_v51 = vld [vmem:[%s3793_s10 + $0x158] sm:$0xff] }
 0x28f   : > { %v3223_v14 = vpack.c.bf16 %v4474_v32, %v4469_v48 }
 0x291   : > { %2796 = vmatmul.mubr.f32.vlgmr.msra.gmra.mrb[16].mxu0 %v946_v33  ;;  %3224 = vmatprep.subr.bf16.mxu1 %v3223_v14  ;;  %v970_v33 = vld [vmem:[%s3793_s10 + $0x1c8] sm:$0xff] }
 0x292   : > { %3226 = vmatpush3.bf16.msra.mxu1 %v3223_v14  ;;  %2798 = vmatprep.mubr.f32.mxu0 %v947_v39  ;;  %v957_v14 = vld [vmem:[%s3793_s10 + $0x160] sm:$0xff]  ;;  %v971_v39 = vld [vmem:[%s3793_s10 + $0x1d0] sm:$0xff] }
 0x295   : > { %2799 = vmatmul.mubr.f32.gmra.mrb[18].mxu0 %v948_v55  ;;  %2852 = vmatmul.mubr.f32.vlgmr.msra.gmra.mrb[16].mxu1 %v962_v22  ;;  %v958_v55 = vld [vmem:[%s3793_s10 + $0x168] sm:$0xff]  ;;  %v972_v22 = vld [vmem:[%s3793_s10 + $0x1d8] sm:$0xff] }
 0x296   : > { %2801 = vmatprep.mubr.f32.mxu0 %v949_v0  ;;  %2854 = vmatprep.mubr.f32.mxu1 %v963_v50  ;;  %v959_v0 = vld [vmem:[%s3793_s10 + $0x170] sm:$0xff]  ;;  %v973_v50 = vld [vmem:[%s3793_s10 + $0x1e0] sm:$0xff] }
 0x299   : > { %2802 = vmatmul.mubr.f32.gmra.mrb[20].mxu0 %v950_v58  ;;  %2855 = vmatmul.mubr.f32.gmra.mrb[18].mxu1 %v964_v47  ;;  %v960_v58 = vld [vmem:[%s3793_s10 + $0x178] sm:$0xff]  ;;  %v974_v47 = vld [vmem:[%s3793_s10 + $0x1e8] sm:$0xff] }
 0x29a   : > { %2804 = vmatprep.mubr.f32.mxu0 %v951_v7  ;;  %2857 = vmatprep.mubr.f32.mxu1 %v965_v6  ;;  %v975_v7 = vld [vmem:[%s3793_s10 + $0x1f0] sm:$0xff]  ;;  %v976_v6 = vld [vmem:[%s3793_s10 + $0x1f8] sm:$0xff] }
 0x29d   : > { %2805 = vmatmul.mubr.f32.gmra.mrb[22].mxu0 %v952_v49  ;;  %2858 = vmatmul.mubr.f32.gmra.mrb[20].mxu1 %v966_v15 }
 0x29e   : > { %2807 = vmatprep.mubr.f32.mxu0 %v953_v21  ;;  %2860 = vmatprep.mubr.f32.mxu1 %v967_v56 }
 0x2a1   : > { %2808 = vmatmul.mubr.f32.gmra.mrb[24].mxu0 %v954_v38  ;;  %2861 = vmatmul.mubr.f32.gmra.mrb[22].mxu1 %v968_v57 }
 0x2a2   : > { %2810 = vmatprep.mubr.f32.mxu0 %v955_v19  ;;  %2863 = vmatprep.mubr.f32.mxu1 %v969_v11 }
 0x2a5   : > { %2811 = vmatmul.mubr.f32.gmra.mrb[26].mxu0 %v956_v51  ;;  %2864 = vmatmul.mubr.f32.gmra.mrb[24].mxu1 %v970_v33 }
 0x2a6   : > { %2813 = vmatprep.mubr.f32.mxu0 %v957_v14  ;;  %2866 = vmatprep.mubr.f32.mxu1 %v971_v39 }
 0x2a9   : > { %2814 = vmatmul.mubr.f32.gmra.mrb[28].mxu0 %v958_v55  ;;  %2867 = vmatmul.mubr.f32.gmra.mrb[26].mxu1 %v972_v22 }
 0x2aa   : > { %2816 = vmatprep.mubr.f32.mxu0 %v959_v0  ;;  %2869 = vmatprep.mubr.f32.mxu1 %v973_v50 }
 0x2ad   : > { %2817 = vmatmul.mubr.f32.gmra.mrb[30].mxu0 %v960_v58  ;;  %2870 = vmatmul.mubr.f32.gmra.mrb[28].mxu1 %v974_v47 }
 0x2ae   : > { %2907 = vmatprep.mubr.f32.mxu0 %v3905_v62  ;;  %2872 = vmatprep.mubr.f32.mxu1 %v975_v7 }
 0x2b1   : > { %2873 = vmatmul.mubr.f32.gmra.mrb[30].mxu1 %v976_v6 }
 0x2b2   : > { %2963 = vmatprep.mubr.f32.mxu1 %v3930_v17 }
 0x324   : > { %v2685_v49 = vpop.f32.mrb[0].mxu0 }
 0x325   : > { %v1043_v15 = vpop.f32.mrb[1].mxu0 }
 0x326   : > { %v3227_v21 = vpack.c.bf16 %v2685_v49, %v1043_v15 }
 0x328   : > { %v2688_v56 = vpop.f32.mrb[2].mxu0  ;;  %v2741_v38 = vpop.f32.mrb[0].mxu1  ;;  %3228 = vmatprep.subr.bf16.mxu0 %v3227_v21 }
 0x329   : > { %v1053_v57 = vpop.f32.mrb[3].mxu0  ;;  %v1188_v19 = vpop.f32.mrb[1].mxu1  ;;  %3230 = vmatpush3.bf16.msra.mxu0 %v3227_v21 }
 0x32a   : > { %v3231_v11 = vpack.c.bf16 %v2688_v56, %v1053_v57  ;;  %v3259_v51 = vpack.c.bf16 %v2741_v38, %v1188_v19 }
 0x32c   : > { %v2691_v33 = vpop.f32.mrb[4].mxu0  ;;  %v2744_v14 = vpop.f32.mrb[2].mxu1  ;;  %3232 = vmatprep.subr.bf16.mxu0 %v3231_v11  ;;  %3260 = vmatprep.subr.bf16.mxu1 %v3259_v51 }
 0x32d   : > { %v1063_v62 = vpop.f32.mrb[5].mxu0  ;;  %v1198_v39 = vpop.f32.mrb[3].mxu1  ;;  %3234 = vmatpush3.bf16.msra.mxu0 %v3231_v11  ;;  %3262 = vmatpush3.bf16.msra.mxu1 %v3259_v51 }
 0x32e   : > { %v3235_v17 = vpack.c.bf16 %v2691_v33, %v1063_v62  ;;  %v3263_v55 = vpack.c.bf16 %v2744_v14, %v1198_v39 }
 0x330   : > { %v2694_v22 = vpop.f32.mrb[6].mxu0  ;;  %v2747_v0 = vpop.f32.mrb[4].mxu1  ;;  %3236 = vmatprep.subr.bf16.mxu0 %v3235_v17  ;;  %3264 = vmatprep.subr.bf16.mxu1 %v3263_v55 }
 0x331   : > { %v1073_v50 = vpop.f32.mrb[7].mxu0  ;;  %v1208_v58 = vpop.f32.mrb[5].mxu1  ;;  %3238 = vmatpush3.bf16.msra.mxu0 %v3235_v17  ;;  %3266 = vmatpush3.bf16.msra.mxu1 %v3263_v55 }
 0x332   : > { %v3239_v47 = vpack.c.bf16 %v2694_v22, %v1073_v50  ;;  %v3267_v7 = vpack.c.bf16 %v2747_v0, %v1208_v58 }
 0x334   : > { %v2697_v6 = vpop.f32.mrb[8].mxu0  ;;  %v2750_v49 = vpop.f32.mrb[6].mxu1  ;;  %3240 = vmatprep.subr.bf16.mxu0 %v3239_v47  ;;  %3268 = vmatprep.subr.bf16.mxu1 %v3267_v7 }
 0x335   : > { %v1083_v15 = vpop.f32.mrb[9].mxu0  ;;  %v1218_v21 = vpop.f32.mrb[7].mxu1  ;;  %3242 = vmatpush3.bf16.msra.mxu0 %v3239_v47  ;;  %3270 = vmatpush3.bf16.msra.mxu1 %v3267_v7 }
 0x336   : > { %v3243_v56 = vpack.c.bf16 %v2697_v6, %v1083_v15  ;;  %v3271_v38 = vpack.c.bf16 %v2750_v49, %v1218_v21 }
 0x338   : > { %v2700_v57 = vpop.f32.mrb[10].mxu0  ;;  %v2753_v19 = vpop.f32.mrb[8].mxu1  ;;  %3244 = vmatprep.subr.bf16.mxu0 %v3243_v56  ;;  %3272 = vmatprep.subr.bf16.mxu1 %v3271_v38 }
 0x339   : > { %v1093_v11 = vpop.f32.mrb[11].mxu0  ;;  %v1228_v51 = vpop.f32.mrb[9].mxu1  ;;  %3246 = vmatpush3.bf16.msra.mxu0 %v3243_v56  ;;  %3274 = vmatpush3.bf16.msra.mxu1 %v3271_v38 }
 0x33a   : > { %v3247_v33 = vpack.c.bf16 %v2700_v57, %v1093_v11  ;;  %v3275_v14 = vpack.c.bf16 %v2753_v19, %v1228_v51 }
 0x33c   : > { %v2703_v62 = vpop.f32.mrb[12].mxu0  ;;  %v2756_v39 = vpop.f32.mrb[10].mxu1  ;;  %3248 = vmatprep.subr.bf16.mxu0 %v3247_v33  ;;  %3276 = vmatprep.subr.bf16.mxu1 %v3275_v14 }
 0x33d   : > { %v1103_v17 = vpop.f32.mrb[13].mxu0  ;;  %v1238_v55 = vpop.f32.mrb[11].mxu1  ;;  %3250 = vmatpush3.bf16.msra.mxu0 %v3247_v33  ;;  %3278 = vmatpush3.bf16.msra.mxu1 %v3275_v14 }
 0x33e   : > { %v3251_v22 = vpack.c.bf16 %v2703_v62, %v1103_v17  ;;  %v3279_v0 = vpack.c.bf16 %v2756_v39, %v1238_v55 }
 0x340   : > { %v2706_v50 = vpop.f32.mrb[14].mxu0  ;;  %v2759_v58 = vpop.f32.mrb[12].mxu1  ;;  %3252 = vmatprep.subr.bf16.mxu0 %v3251_v22  ;;  %3280 = vmatprep.subr.bf16.mxu1 %v3279_v0 }
 0x341   : > { %v1113_v47 = vpop.f32.mrb[15].mxu0  ;;  %v1248_v7 = vpop.f32.mrb[13].mxu1  ;;  %3254 = vmatpush3.bf16.msra.mxu0 %v3251_v22  ;;  %3282 = vmatpush3.bf16.msra.mxu1 %v3279_v0 }
 0x342   : > { %v3255_v6 = vpack.c.bf16 %v2706_v50, %v1113_v47  ;;  %v3283_v49 = vpack.c.bf16 %v2759_v58, %v1248_v7 }
 0x344   : > { %v2762_v15 = vpop.f32.mrb[14].mxu1  ;;  %3256 = vmatprep.subr.bf16.mxu0 %v3255_v6  ;;  %3284 = vmatprep.subr.bf16.mxu1 %v3283_v49 }
 0x345   : > { %v1258_v21 = vpop.f32.mrb[15].mxu1  ;;  %3258 = vmatpush3.bf16.msra.mxu0 %v3255_v6  ;;  %3286 = vmatpush3.bf16.msra.mxu1 %v3283_v49 }
 0x346   : > { %v3287_v56 = vpack.c.bf16 %v2762_v15, %v1258_v21 }
 0x348   : > { %2908 = vmatmul.mubr.f32.vlgmr.msra.gmra.mrb[32].mxu0 %v3910_v63  ;;  %3288 = vmatprep.subr.bf16.mxu1 %v3287_v56  ;;  %v4776_v63 = vld [vmem:[#allocation16_spill] sm:$0xff] }
 0x349   : > { %2910 = vmatprep.mubr.f32.mxu0 %v3949_v28  ;;  %3290 = vmatpush3.bf16.msra.mxu1 %v3287_v56  ;;  %v4778_v28 = vld [vmem:[#allocation17_spill] sm:$0xff] }
 0x34c   : > { %2911 = vmatmul.mubr.f32.gmra.mrb[34].mxu0 %v3954_v29  ;;  %2964 = vmatmul.mubr.f32.vlgmr.msra.gmra.mrb[32].mxu1 %v3935_v18  ;;  %v4777_v18 = vld [vmem:[#allocation14_spill] sm:$0xff]  ;;  %v4779_v29 = vld [vmem:[#allocation15_spill] sm:$0xff] }
 0x34d   : > { %2913 = vmatprep.mubr.f32.mxu0 %v3987_v59  ;;  %2966 = vmatprep.mubr.f32.mxu1 %v3968_v40  ;;  %v4780_v40 = vld [vmem:[#allocation20_spill] sm:$0xff] }
 0x350   : > { %2914 = vmatmul.mubr.f32.gmra.mrb[36].mxu0 %v3992_v60  ;;  %2967 = vmatmul.mubr.f32.gmra.mrb[34].mxu1 %v3974_v45  ;;  %v4781_v45 = vld [vmem:[#allocation18_spill] sm:$0xff]  ;;  %v4782_v60 = vld [vmem:[#allocation21_spill] sm:$0xff] }
 0x351   : > { %2916 = vmatprep.mubr.f32.mxu0 %v4025_v25  ;;  %2969 = vmatprep.mubr.f32.mxu1 %v4006_v9  ;;  %v4783_v9 = vld [vmem:[#allocation19_spill] sm:$0xff]  ;;  %v4784_v25 = vld [vmem:[#allocation22_spill] sm:$0xff] }
 0x354   : > { %2917 = vmatmul.mubr.f32.gmra.mrb[38].mxu0 %v4030_v26  ;;  %2970 = vmatmul.mubr.f32.gmra.mrb[36].mxu1 %v4012_v13 }
 0x355   : > { %2919 = vmatprep.mubr.f32.mxu0 %v4063_v4  ;;  %2972 = vmatprep.mubr.f32.mxu1 %v4044_v43  ;;  %v4785_v4 = vld [vmem:[#allocation23_spill] sm:$0xff] }
 0x358   : > { %2920 = vmatmul.mubr.f32.gmra.mrb[40].mxu0 %v4068_v5  ;;  %2973 = vmatmul.mubr.f32.gmra.mrb[38].mxu1 %v4050_v52 }
 0x359   : > { %2922 = vmatprep.mubr.f32.mxu0 %v4101_v53  ;;  %2975 = vmatprep.mubr.f32.mxu1 %v4082_v20 }
 0x35c   : > { %2923 = vmatmul.mubr.f32.gmra.mrb[42].mxu0 %v4106_v54  ;;  %2976 = vmatmul.mubr.f32.gmra.mrb[40].mxu1 %v4088_v24 }
 0x35d   : > { %2925 = vmatprep.mubr.f32.mxu0 %v4776_v63  ;;  %2978 = vmatprep.mubr.f32.mxu1 %v4777_v18 }
 0x360   : > { %2926 = vmatmul.mubr.f32.gmra.mrb[44].mxu0 %v4778_v28  ;;  %2979 = vmatmul.mubr.f32.gmra.mrb[42].mxu1 %v4779_v29 }
 0x361   : > { %2928 = vmatprep.mubr.f32.mxu0 %v4780_v40  ;;  %2981 = vmatprep.mubr.f32.mxu1 %v4781_v45 }
 0x364   : > { %v2797_v59 = vpop.f32.mrb[16].mxu0  ;;  %2929 = vmatmul.mubr.f32.gmra.mrb[46].mxu0 %v4782_v60  ;;  %2982 = vmatmul.mubr.f32.gmra.mrb[44].mxu1 %v4783_v9 }
 0x365   : > { %v1333_v13 = vpop.f32.mrb[17].mxu0  ;;  %2984 = vmatprep.mubr.f32.mxu1 %v4784_v25  ;;  %3019 = vmatprep.mubr.f32.mxu0 %v4211_v36 }
 0x366   : > { %v3291_v26 = vpack.c.bf16 %v2797_v59, %v1333_v13 }
 0x368   : > { %v2800_v43 = vpop.f32.mrb[18].mxu0  ;;  %v2853_v52 = vpop.f32.mrb[16].mxu1  ;;  %2985 = vmatmul.mubr.f32.gmra.mrb[46].mxu1 %v4785_v4  ;;  %3292 = vmatprep.subr.bf16.mxu0 %v3291_v26  ;;  %v4786_v4 = vld [vmem:[#allocation24_spill] sm:$0xff] }
 0x369   : > { %v1343_v5 = vpop.f32.mrb[19].mxu0  ;;  %v1478_v20 = vpop.f32.mrb[17].mxu1  ;;  %3294 = vmatpush3.bf16.msra.mxu0 %v3291_v26  ;;  %3075 = vmatprep.mubr.f32.mxu1 %v4227_v2 }
 0x36a   : > { %v3295_v24 = vpack.c.bf16 %v2800_v43, %v1343_v5  ;;  %v3323_v53 = vpack.c.bf16 %v2853_v52, %v1478_v20  ;;  %v4787_v5 = vld [vmem:[#allocation26_spill] sm:$0xff]  ;;  %v4788_v20 = vld [vmem:[#allocation25_spill] sm:$0xff] }
 0x36c   : > { %v2803_v54 = vpop.f32.mrb[20].mxu0  ;;  %v2856_v38 = vpop.f32.mrb[18].mxu1  ;;  %3296 = vmatprep.subr.bf16.mxu0 %v3295_v24  ;;  %3324 = vmatprep.subr.bf16.mxu1 %v3323_v53 }
 0x36d   : > { %v1353_v57 = vpop.f32.mrb[21].mxu0  ;;  %v1488_v19 = vpop.f32.mrb[19].mxu1  ;;  %3298 = vmatpush3.bf16.msra.mxu0 %v3295_v24  ;;  %3326 = vmatpush3.bf16.msra.mxu1 %v3323_v53  ;;  %v4789_v24 = vld [vmem:[#allocation28_spill] sm:$0xff]  ;;  %v4790_v53 = vld [vmem:[#allocation27_spill] sm:$0xff] }
 0x36e   : > { %v3299_v36 = vpack.c.bf16 %v2803_v54, %v1353_v57  ;;  %v3327_v11 = vpack.c.bf16 %v2856_v38, %v1488_v19  ;;  %v4791_v54 = vld [vmem:[#allocation29_spill] sm:$0xff] }
 0x370   : > { %v2806_v51 = vpop.f32.mrb[22].mxu0  ;;  %v2859_v33 = vpop.f32.mrb[20].mxu1  ;;  %3300 = vmatprep.subr.bf16.mxu0 %v3299_v36  ;;  %3328 = vmatprep.subr.bf16.mxu1 %v3327_v11 }
 0x371   : > { %v1363_v14 = vpop.f32.mrb[23].mxu0  ;;  %v1498_v62 = vpop.f32.mrb[21].mxu1  ;;  %3302 = vmatpush3.bf16.msra.mxu0 %v3299_v36  ;;  %3330 = vmatpush3.bf16.msra.mxu1 %v3327_v11 }
 0x372   : > { %v3303_v2 = vpack.c.bf16 %v2806_v51, %v1363_v14  ;;  %v3331_v39 = vpack.c.bf16 %v2859_v33, %v1498_v62 }
 0x374   : > { %v2809_v17 = vpop.f32.mrb[24].mxu0  ;;  %v2862_v55 = vpop.f32.mrb[22].mxu1  ;;  %3304 = vmatprep.subr.bf16.mxu0 %v3303_v2  ;;  %3332 = vmatprep.subr.bf16.mxu1 %v3331_v39 }
 0x375   : > { %v1373_v22 = vpop.f32.mrb[25].mxu0  ;;  %v1508_v0 = vpop.f32.mrb[23].mxu1  ;;  %3306 = vmatpush3.bf16.msra.mxu0 %v3303_v2  ;;  %3334 = vmatpush3.bf16.msra.mxu1 %v3331_v39 }
 0x376   : > { %v3307_v50 = vpack.c.bf16 %v2809_v17, %v1373_v22  ;;  %v3335_v58 = vpack.c.bf16 %v2862_v55, %v1508_v0 }
 0x378   : > { %v2812_v47 = vpop.f32.mrb[26].mxu0  ;;  %v2865_v7 = vpop.f32.mrb[24].mxu1  ;;  %3308 = vmatprep.subr.bf16.mxu0 %v3307_v50  ;;  %3336 = vmatprep.subr.bf16.mxu1 %v3335_v58 }
 0x379   : > { %v1383_v6 = vpop.f32.mrb[27].mxu0  ;;  %v1518_v49 = vpop.f32.mrb[25].mxu1  ;;  %3310 = vmatpush3.bf16.msra.mxu0 %v3307_v50  ;;  %3338 = vmatpush3.bf16.msra.mxu1 %v3335_v58 }
 0x37a   : > { %v3311_v15 = vpack.c.bf16 %v2812_v47, %v1383_v6  ;;  %v3339_v21 = vpack.c.bf16 %v2865_v7, %v1518_v49 }
 0x37c   : > { %v2815_v56 = vpop.f32.mrb[28].mxu0  ;;  %v2868_v63 = vpop.f32.mrb[26].mxu1  ;;  %3312 = vmatprep.subr.bf16.mxu0 %v3311_v15  ;;  %3340 = vmatprep.subr.bf16.mxu1 %v3339_v21 }
 0x37d   : > { %v1393_v18 = vpop.f32.mrb[29].mxu0  ;;  %v1528_v28 = vpop.f32.mrb[27].mxu1  ;;  %3314 = vmatpush3.bf16.msra.mxu0 %v3311_v15  ;;  %3342 = vmatpush3.bf16.msra.mxu1 %v3339_v21 }
 0x37e   : > { %v3315_v29 = vpack.c.bf16 %v2815_v56, %v1393_v18  ;;  %v3343_v40 = vpack.c.bf16 %v2868_v63, %v1528_v28 }
 0x380   : > { %v2818_v45 = vpop.f32.mrb[30].mxu0  ;;  %v2871_v59 = vpop.f32.mrb[28].mxu1  ;;  %3316 = vmatprep.subr.bf16.mxu0 %v3315_v29  ;;  %3344 = vmatprep.subr.bf16.mxu1 %v3343_v40 }
 0x381   : > { %v1403_v60 = vpop.f32.mrb[31].mxu0  ;;  %v1538_v9 = vpop.f32.mrb[29].mxu1  ;;  %3318 = vmatpush3.bf16.msra.mxu0 %v3315_v29  ;;  %3346 = vmatpush3.bf16.msra.mxu1 %v3343_v40 }
 0x382   : > { %v3319_v13 = vpack.c.bf16 %v2818_v45, %v1403_v60  ;;  %v3347_v25 = vpack.c.bf16 %v2871_v59, %v1538_v9 }
 0x384   : > { %v2874_v26 = vpop.f32.mrb[30].mxu1  ;;  %3320 = vmatprep.subr.bf16.mxu0 %v3319_v13  ;;  %3348 = vmatprep.subr.bf16.mxu1 %v3347_v25 }
 0x385   : > { %v1548_v43 = vpop.f32.mrb[31].mxu1  ;;  %3322 = vmatpush3.bf16.msra.mxu0 %v3319_v13  ;;  %3350 = vmatpush3.bf16.msra.mxu1 %v3347_v25 }
 0x386   : > { %v3351_v52 = vpack.c.bf16 %v2874_v26, %v1548_v43 }
 0x388   : > { %3020 = vmatmul.mubr.f32.vlgmr.msra.gmra.mrb[48].mxu0 %v4786_v4  ;;  %3352 = vmatprep.subr.bf16.mxu1 %v3351_v52 }
 0x389   : > { %3022 = vmatprep.mubr.f32.mxu0 %v4250_v42  ;;  %3354 = vmatpush3.bf16.msra.mxu1 %v3351_v52  ;;  %v4792_v42 = vld [vmem:[#allocation30_spill] sm:$0xff] }
 0x38c   : > { %3023 = vmatmul.mubr.f32.gmra.mrb[50].mxu0 %v4787_v5  ;;  %3076 = vmatmul.mubr.f32.vlgmr.msra.gmra.mrb[48].mxu1 %v4788_v20 }
 0x38d   : > { %3025 = vmatprep.mubr.f32.mxu0 %v4293_v12  ;;  %3078 = vmatprep.mubr.f32.mxu1 %v4276_v16  ;;  %v4793_v16 = vld [vmem:[#allocation31_spill] sm:$0xff]  ;;  %v4794_v12 = vld [vmem:[#allocation32_spill] sm:$0xff] }
 0x390   : > { %3026 = vmatmul.mubr.f32.gmra.mrb[52].mxu0 %v4789_v24  ;;  %3079 = vmatmul.mubr.f32.gmra.mrb[50].mxu1 %v4790_v53 }
 0x391   : > { %3028 = vmatprep.mubr.f32.mxu0 %v4340_v8  ;;  %3081 = vmatprep.mubr.f32.mxu1 %v4791_v54  ;;  %v4795_v8 = vld [vmem:[#allocation33_spill] sm:$0xff] }
 0x394   : > { %3029 = vmatmul.mubr.f32.gmra.mrb[54].mxu0 %v4345_v27  ;;  %3082 = vmatmul.mubr.f32.gmra.mrb[52].mxu1 %v4792_v42 }
 0x395   : > { %3031 = vmatprep.mubr.f32.mxu0 %v4372_v1  ;;  %3084 = vmatprep.mubr.f32.mxu1 %v4355_v31 }
 0x398   : > { %3032 = vmatmul.mubr.f32.gmra.mrb[56].mxu0 %v4378_v44  ;;  %3085 = vmatmul.mubr.f32.gmra.mrb[54].mxu1 %v4363_v35 }
 0x399   : > { %3034 = vmatprep.mubr.f32.mxu0 %v4400_v30  ;;  %3087 = vmatprep.mubr.f32.mxu1 %v4793_v16 }
 0x39c   : > { %3035 = vmatmul.mubr.f32.gmra.mrb[58].mxu0 %v4406_v23  ;;  %3088 = vmatmul.mubr.f32.gmra.mrb[56].mxu1 %v4794_v12 }
 0x39d   : > { %3037 = vmatprep.mubr.f32.mxu0 %v4428_v10  ;;  %3090 = vmatprep.mubr.f32.mxu1 %v4415_v37 }
 0x3a0   : > { %3038 = vmatmul.mubr.f32.gmra.mrb[60].mxu0 %v4434_v34  ;;  %3091 = vmatmul.mubr.f32.gmra.mrb[58].mxu1 %v4795_v8 }
 0x3a1   : > { %3040 = vmatprep.mubr.f32.mxu0 %v4455_v46  ;;  %3093 = vmatprep.mubr.f32.mxu1 %v4443_v3 }
 0x3a4   : > { %3041 = vmatmul.mubr.f32.gmra.mrb[62].mxu0 %v4461_v61  ;;  %3094 = vmatmul.mubr.f32.gmra.mrb[60].mxu1 %v4448_v41 }
 0x3a5   : > { %3096 = vmatprep.mubr.f32.mxu1 %v4469_v48 }
 0x3a8   : > { %3097 = vmatmul.mubr.f32.gmra.mrb[62].mxu1 %v4474_v32 }
 0x3a9   : > { %3508 = shalt.err (!%p3505_p3)
}
 0x3aa   : > { %s3509_s28 = scalar_lea.hbm %s4575_s5, 64  ;;  %s3513_s7 = scalar_lea.hbm %s4725_s2, 128 }
 0x3ab   : > { %p3510_p12 = scmp.ne.s32.totalorder %s4575_s5, %s3509_s28  ;;  %p3514_p2 = scmp.lt.u32.totalorder %s4575_s5, %s4725_s2 }
 0x3ac   : > { %p3515_p4 = scmp.lt.u32.totalorder %s3513_s7, %s3509_s28  ;;  %p3517_p13 = scmp.lt.u32.totalorder %s3509_s28, %s4575_s5 }
 0x3ad   : > { %p3511_p8 = pnand %p3510_p12, %p4796_p1 }
 0x3ae   : > { %p3516_p6 = por %p3515_p4, %p3514_p2 }
 0x3af   : > { %p3512_p0 = pneg %p3511_p8 }
 0x3b0   : > { %p3518_p11 = por %p3517_p13, %p3516_p6 }
 0x3b2   : > { %p3519_p10 = pnand %p3518_p11, %p3512_p0 }
 0x3b4   : > { %3522 = shalt.err (!%p3519_p10)
}
 0x3b5   : > { %s3606_s19 = smov 16   ;;  %s3607_s27 = smov 1  }
 0x3b6   : > { %3359 = dma.vmem_to_hbm [thread:$0]  (%p4796_p1), %s4578_s9, 64, %s4575_s5, %s2202_s11, %s3606_s19, %s3606_s19, %s3607_s27  }
 0x3b7   : > { %s4606_s4 = scalar_lea.vmem [#allocation8], %s2377_s26  ;;  %s2394_s26 = sshll.u32 %s3652_s16, 13 }
 0x3b8   : > { %s2237_s5 = sshll.u32 %s4606_s4, 4  ;;  %s4675_s17 = scalar_lea.hbm %s4726_s3, %s2394_s26  ;;  %s4677_s5 = int_to_ptr.vmem [resolvable:$true] %s2237_s5 }
 0x3b9   : > { %s2207_s16 = scalar_lea.sflag [#allocation9], %s3779_s8  ;;  %s3523_s20 = scalar_lea.vmem %s4677_s5, 8192 }
 0x3ba   : > { %p3524_p5 = scmp.ne.s32.totalorder %s4677_s5, %s3523_s20  ;;  %s3608_s22 = smov [#allocation8]  }
 0x3bb   : > { %s3527_s6 = sshll.u32 %s3608_s22, 4  ;;  %s3528_s6 = int_to_ptr.vmem [resolvable:$false] %s3527_s6 }
 0x3bc   : > { %p3525_p7 = pnand %p3524_p5, %p4796_p1  ;;  %s3529_s28 = scalar_lea.vmem %s3528_s6, 16384 }
 0x3bd   : > { %p3530_p3 = scmp.lt.s32.totalorder %s4677_s5, %s3528_s6  ;;  %p3531_p12 = scmp.lt.s32.totalorder %s3529_s28, %s3523_s20 }
 0x3be   : > { %p3526_p9 = pneg %p3525_p7 }
 0x3bf   : > { %p3532_p8 = por %p3531_p12, %p3530_p3 }
 0x3c1   : > { %p3533_p0 = pnand %p3532_p8, %p3526_p9 }
 0x41b   : > { %v2909_v27 = vpop.f32.mrb[32].mxu0 }
 0x41c   : > { %2138 = vst [vmem:[%s4606_s4 + $0x8] sm:$0xff] %v2909_v27  ;;  %v1623_v31 = vpop.f32.mrb[33].mxu0 }
 0x41d   : > { %2137 = vst [vmem:[%s4606_s4] sm:$0xff] %v1623_v31 }
 0x41f   : > { %v2912_v35 = vpop.f32.mrb[34].mxu0  ;;  %v2965_v1 = vpop.f32.mrb[32].mxu1 }
 0x420   : > { %2140 = vst [vmem:[%s4606_s4 + $0x18] sm:$0xff] %v2912_v35  ;;  %2154 = vst [vmem:[%s4606_s4 + $0x88] sm:$0xff] %v2965_v1  ;;  %v1633_v44 = vpop.f32.mrb[35].mxu0  ;;  %v1768_v30 = vpop.f32.mrb[33].mxu1 }
 0x421   : > { %2139 = vst [vmem:[%s4606_s4 + $0x10] sm:$0xff] %v1633_v44  ;;  %2153 = vst [vmem:[%s4606_s4 + $0x80] sm:$0xff] %v1768_v30 }
 0x423   : > { %v2915_v23 = vpop.f32.mrb[36].mxu0  ;;  %v2968_v37 = vpop.f32.mrb[34].mxu1 }
 0x424   : > { %2142 = vst [vmem:[%s4606_s4 + $0x28] sm:$0xff] %v2915_v23  ;;  %2156 = vst [vmem:[%s4606_s4 + $0x98] sm:$0xff] %v2968_v37  ;;  %v1643_v10 = vpop.f32.mrb[37].mxu0  ;;  %v1778_v34 = vpop.f32.mrb[35].mxu1 }
 0x425   : > { %2141 = vst [vmem:[%s4606_s4 + $0x20] sm:$0xff] %v1643_v10  ;;  %2155 = vst [vmem:[%s4606_s4 + $0x90] sm:$0xff] %v1778_v34 }
 0x427   : > { %v2918_v3 = vpop.f32.mrb[38].mxu0  ;;  %v2971_v41 = vpop.f32.mrb[36].mxu1 }
 0x428   : > { %2144 = vst [vmem:[%s4606_s4 + $0x38] sm:$0xff] %v2918_v3  ;;  %2158 = vst [vmem:[%s4606_s4 + $0xa8] sm:$0xff] %v2971_v41  ;;  %v1653_v46 = vpop.f32.mrb[39].mxu0  ;;  %v1788_v61 = vpop.f32.mrb[37].mxu1 }
 0x429   : > { %2143 = vst [vmem:[%s4606_s4 + $0x30] sm:$0xff] %v1653_v46  ;;  %2157 = vst [vmem:[%s4606_s4 + $0xa0] sm:$0xff] %v1788_v61 }
 0x42b   : > { %v2921_v48 = vpop.f32.mrb[40].mxu0  ;;  %v2974_v32 = vpop.f32.mrb[38].mxu1 }
 0x42c   : > { %2146 = vst [vmem:[%s4606_s4 + $0x48] sm:$0xff] %v2921_v48  ;;  %2160 = vst [vmem:[%s4606_s4 + $0xb8] sm:$0xff] %v2974_v32  ;;  %v1663_v38 = vpop.f32.mrb[41].mxu0  ;;  %v1798_v57 = vpop.f32.mrb[39].mxu1 }
 0x42d   : > { %2145 = vst [vmem:[%s4606_s4 + $0x40] sm:$0xff] %v1663_v38  ;;  %2159 = vst [vmem:[%s4606_s4 + $0xb0] sm:$0xff] %v1798_v57 }
 0x42f   : > { %v2924_v19 = vpop.f32.mrb[42].mxu0  ;;  %v2977_v36 = vpop.f32.mrb[40].mxu1 }
 0x430   : > { %2148 = vst [vmem:[%s4606_s4 + $0x58] sm:$0xff] %v2924_v19  ;;  %2162 = vst [vmem:[%s4606_s4 + $0xc8] sm:$0xff] %v2977_v36  ;;  %v1673_v11 = vpop.f32.mrb[43].mxu0  ;;  %v1808_v51 = vpop.f32.mrb[41].mxu1 }
 0x431   : > { %2147 = vst [vmem:[%s4606_s4 + $0x50] sm:$0xff] %v1673_v11  ;;  %2161 = vst [vmem:[%s4606_s4 + $0xc0] sm:$0xff] %v1808_v51 }
 0x433   : > { %v2927_v33 = vpop.f32.mrb[44].mxu0  ;;  %v2980_v14 = vpop.f32.mrb[42].mxu1 }
 0x434   : > { %2150 = vst [vmem:[%s4606_s4 + $0x68] sm:$0xff] %v2927_v33  ;;  %2164 = vst [vmem:[%s4606_s4 + $0xd8] sm:$0xff] %v2980_v14  ;;  %v1683_v62 = vpop.f32.mrb[45].mxu0  ;;  %v1818_v2 = vpop.f32.mrb[43].mxu1 }
 0x435   : > { %2149 = vst [vmem:[%s4606_s4 + $0x60] sm:$0xff] %v1683_v62  ;;  %2163 = vst [vmem:[%s4606_s4 + $0xd0] sm:$0xff] %v1818_v2 }
 0x437   : > { %v2930_v39 = vpop.f32.mrb[46].mxu0  ;;  %v2983_v17 = vpop.f32.mrb[44].mxu1 }
 0x438   : > { %2152 = vst [vmem:[%s4606_s4 + $0x78] sm:$0xff] %v2930_v39  ;;  %2166 = vst [vmem:[%s4606_s4 + $0xe8] sm:$0xff] %v2983_v17  ;;  %v1693_v55 = vpop.f32.mrb[47].mxu0  ;;  %v1828_v22 = vpop.f32.mrb[45].mxu1 }
 0x439   : > { %2151 = vst [vmem:[%s4606_s4 + $0x70] sm:$0xff] %v1693_v55  ;;  %2165 = vst [vmem:[%s4606_s4 + $0xe0] sm:$0xff] %v1828_v22 }
 0x43b   : > { %v2986_v0 = vpop.f32.mrb[46].mxu1 }
 0x43c   : > { %2168 = vst [vmem:[%s4606_s4 + $0xf8] sm:$0xff] %v2986_v0  ;;  %v1838_v50 = vpop.f32.mrb[47].mxu1 }
 0x43d   : > { %2167 = vst [vmem:[%s4606_s4 + $0xf0] sm:$0xff] %v1838_v50 }
 0x45b   : > { %v3021_v58 = vpop.f32.mrb[48].mxu0 }
 0x45c   : > { %2170 = vst [vmem:[%s4606_s4 + $0x108] sm:$0xff] %v3021_v58  ;;  %v1913_v47 = vpop.f32.mrb[49].mxu0 }
 0x45d   : > { %2169 = vst [vmem:[%s4606_s4 + $0x100] sm:$0xff] %v1913_v47 }
 0x45f   : > { %v3024_v7 = vpop.f32.mrb[50].mxu0  ;;  %v3077_v6 = vpop.f32.mrb[48].mxu1 }
 0x460   : > { %2172 = vst [vmem:[%s4606_s4 + $0x118] sm:$0xff] %v3024_v7  ;;  %2186 = vst [vmem:[%s4606_s4 + $0x188] sm:$0xff] %v3077_v6  ;;  %v1923_v49 = vpop.f32.mrb[51].mxu0  ;;  %v2058_v15 = vpop.f32.mrb[49].mxu1 }
 0x461   : > { %2171 = vst [vmem:[%s4606_s4 + $0x110] sm:$0xff] %v1923_v49  ;;  %2185 = vst [vmem:[%s4606_s4 + $0x180] sm:$0xff] %v2058_v15 }
 0x463   : > { %v3027_v21 = vpop.f32.mrb[52].mxu0  ;;  %v3080_v56 = vpop.f32.mrb[50].mxu1 }
 0x464   : > { %2174 = vst [vmem:[%s4606_s4 + $0x128] sm:$0xff] %v3027_v21  ;;  %2188 = vst [vmem:[%s4606_s4 + $0x198] sm:$0xff] %v3080_v56  ;;  %v1933_v63 = vpop.f32.mrb[53].mxu0  ;;  %v2068_v18 = vpop.f32.mrb[51].mxu1 }
 0x465   : > { %2173 = vst [vmem:[%s4606_s4 + $0x120] sm:$0xff] %v1933_v63  ;;  %2187 = vst [vmem:[%s4606_s4 + $0x190] sm:$0xff] %v2068_v18 }
 0x467   : > { %v3030_v28 = vpop.f32.mrb[54].mxu0  ;;  %v3083_v29 = vpop.f32.mrb[52].mxu1 }
 0x468   : > { %2176 = vst [vmem:[%s4606_s4 + $0x138] sm:$0xff] %v3030_v28  ;;  %2190 = vst [vmem:[%s4606_s4 + $0x1a8] sm:$0xff] %v3083_v29  ;;  %v1943_v40 = vpop.f32.mrb[55].mxu0  ;;  %v2078_v45 = vpop.f32.mrb[53].mxu1 }
 0x469   : > { %2175 = vst [vmem:[%s4606_s4 + $0x130] sm:$0xff] %v1943_v40  ;;  %2189 = vst [vmem:[%s4606_s4 + $0x1a0] sm:$0xff] %v2078_v45 }
 0x46b   : > { %v3033_v59 = vpop.f32.mrb[56].mxu0  ;;  %v3086_v60 = vpop.f32.mrb[54].mxu1 }
 0x46c   : > { %2178 = vst [vmem:[%s4606_s4 + $0x148] sm:$0xff] %v3033_v59  ;;  %2192 = vst [vmem:[%s4606_s4 + $0x1b8] sm:$0xff] %v3086_v60  ;;  %v1953_v9 = vpop.f32.mrb[57].mxu0  ;;  %v2088_v13 = vpop.f32.mrb[55].mxu1 }
 0x46d   : > { %2177 = vst [vmem:[%s4606_s4 + $0x140] sm:$0xff] %v1953_v9  ;;  %2191 = vst [vmem:[%s4606_s4 + $0x1b0] sm:$0xff] %v2088_v13 }
 0x46f   : > { %v3036_v25 = vpop.f32.mrb[58].mxu0  ;;  %v3089_v26 = vpop.f32.mrb[56].mxu1 }
 0x470   : > { %2180 = vst [vmem:[%s4606_s4 + $0x158] sm:$0xff] %v3036_v25  ;;  %2194 = vst [vmem:[%s4606_s4 + $0x1c8] sm:$0xff] %v3089_v26  ;;  %v1963_v43 = vpop.f32.mrb[59].mxu0  ;;  %v2098_v52 = vpop.f32.mrb[57].mxu1 }
 0x471   : > { %2179 = vst [vmem:[%s4606_s4 + $0x150] sm:$0xff] %v1963_v43  ;;  %2193 = vst [vmem:[%s4606_s4 + $0x1c0] sm:$0xff] %v2098_v52 }
 0x473   : > { %v3039_v4 = vpop.f32.mrb[60].mxu0  ;;  %v3092_v5 = vpop.f32.mrb[58].mxu1 }
 0x474   : > { %2182 = vst [vmem:[%s4606_s4 + $0x168] sm:$0xff] %v3039_v4  ;;  %2196 = vst [vmem:[%s4606_s4 + $0x1d8] sm:$0xff] %v3092_v5  ;;  %v1973_v20 = vpop.f32.mrb[61].mxu0  ;;  %v2108_v24 = vpop.f32.mrb[59].mxu1 }
 0x475   : > { %2181 = vst [vmem:[%s4606_s4 + $0x160] sm:$0xff] %v1973_v20  ;;  %2195 = vst [vmem:[%s4606_s4 + $0x1d0] sm:$0xff] %v2108_v24 }
 0x477   : > { %v3042_v53 = vpop.f32.mrb[62].mxu0  ;;  %v3095_v54 = vpop.f32.mrb[60].mxu1 }
 0x478   : > { %2184 = vst [vmem:[%s4606_s4 + $0x178] sm:$0xff] %v3042_v53  ;;  %2198 = vst [vmem:[%s4606_s4 + $0x1e8] sm:$0xff] %v3095_v54  ;;  %v1983_v42 = vpop.f32.mrb[63].mxu0  ;;  %v2118_v16 = vpop.f32.mrb[61].mxu1 }
 0x479   : > { %2183 = vst [vmem:[%s4606_s4 + $0x170] sm:$0xff] %v1983_v42  ;;  %2197 = vst [vmem:[%s4606_s4 + $0x1e0] sm:$0xff] %v2118_v16 }
 0x47b   : > { %v3098_v12 = vpop.f32.mrb[62].mxu1 }
 0x47c   : > { %2200 = vst [vmem:[%s4606_s4 + $0x1f8] sm:$0xff] %v3098_v12  ;;  %v2128_v8 = vpop.f32.mrb[63].mxu1 }
 0x47d   : > { %2199 = vst [vmem:[%s4606_s4 + $0x1f0] sm:$0xff] %v2128_v8 }
 0x47e   : > { %3536 = shalt.err (!%p3533_p0)
}
 0x47f   : > { %s3537_s29 = scalar_lea.hbm %s4675_s17, 8192  ;;  %s3541_s10 = scalar_lea.hbm %s4726_s3, 16384 }
 0x480   : > { %p3538_p2 = scmp.ne.s32.totalorder %s4675_s17, %s3537_s29  ;;  %p3542_p13 = scmp.lt.u32.totalorder %s4675_s17, %s4726_s3 }
 0x481   : > { %p3543_p11 = scmp.lt.u32.totalorder %s3541_s10, %s3537_s29  ;;  %p3545_p5 = scmp.lt.u32.totalorder %s3537_s29, %s4675_s17 }
 0x482   : > { %p3539_p4 = pnand %p3538_p2, %p4796_p1 }
 0x483   : > { %p3544_p10 = por %p3543_p11, %p3542_p13 }
 0x484   : > { %p3540_p6 = pneg %p3539_p4 }
 0x485   : > { %p3546_p7 = por %p3545_p5, %p3544_p10 }
 0x487   : > { %p3547_p9 = pnand %p3546_p7, %p3540_p6 }
 0x489   : > { %3550 = shalt.err (!%p3547_p9)
}
 0x48a   : > { %s3609_s27 = smov 128   ;;  %s3610_s4 = smov 8  }
 0x48b   : > { %3360 = dma.vmem_to_hbm [thread:$0]  (%p4796_p1), %s4677_s5, 8192, %s4675_s17, %s2207_s16, %s3609_s27, %s3609_s27, %s3610_s4  }
 0x48c PF: > { %s2252_s26 = sand.u32 1, %s3585_s12   ;;  %p4797_p3 = scmp.ne.s32.totalorder %s4752_s25, 0 }
 0x48d   : > { %p4798_p12 = scmp.ge.s32.totalorder %s3597_s15, 2  ;;  %s2253_s9 = scalar_lea.sflag [#allocation4], %s2252_s26 }
 0x48f   : > { %p3371_p8 = pnand %p4798_p12, %p4797_p3 }
 0x491   : > { %3576 = dma.done.wait (!%p3371_p8), %s2253_s9, 64  }
 0x492   : > { %3578 = vsyncadd (!%p3371_p8), %s2253_s9, 4294967232  ;;  %s2262_s11 = scalar_lea.sflag [#allocation9], %s2252_s26 }
 0x493   : > { %3580 = dma.done.wait (!%p3371_p8), %s2262_s11, 8192  }
 0x494   : > { %3582 = vsyncadd (!%p3371_p8), %s2262_s11, 4294959104  ;;  %p23_p1 = scmp.ge.s32.totalorder %s3656_s18, 4   ;;  %s4799_s12 = smov %s3589_s13 }
 0x495   : > { %s4800_s13 = smov %s3593_s14  ;;  %s4801_s14 = smov %s3668_s21 }
 0x496   : > { %s4802_s15 = smov %s3656_s18  ;;  %25 = sbr.rel (!%p23_p1) target bundleno = 9 (0x9), region = 103 }
 0x49d   :  { %2267 = vsyncpa [#allocation3], 1 }
 0x49e   :  { %2269 = vsyncpa [#allocation3 + $0x1], 1 }
 0x49f   :  { %2270 = vsyncpa [#allocation6], 1 }
 0x4a0   :  { %2272 = vsyncpa [#allocation6 + $0x1], 1 }
 0x4a1   :  { %2273 = vsyncpa [#allocation4], 1 }
 0x4a2   :  { %2275 = vsyncpa [#allocation4 + $0x1], 1 }
 0x4a3   :  { %2276 = vsyncpa [#allocation9], 1 }
 0x4a4   :  { %2278 = vsyncpa [#allocation9 + $0x1], 1 }

</bundles_post_ra>
